<compile_context>
chip_gen: v7x
topology: tpu7x:2x2x1
jax: 0.10.0
libtpu: 0.0.40
codegen_flags: <defaults>
</compile_context>

<pallas_src>
import jax
import jax.numpy as jnp
from jax.experimental import pallas as pl
from jax.experimental.pallas import tpu as pltpu


def _round_up(x, m):
    return ((x + m - 1) // m) * m


def conv_bn_elu_forward(x, w, b, gamma, beta, eps=1e-5):
    """Forward of Conv(inChans, outChans, elu=True).

    x:     (B, Cin, D, H, W) float32
    w:     (Cout, Cin, 3, 3, 3) Conv3d weight
    b:     (Cout,) Conv3d bias
    gamma: (Cout,) BatchNorm weight
    beta:  (Cout,) BatchNorm bias
    returns (B, Cout, D, H, W) float32
    """
    B, Cin, D, H, W = x.shape
    Cout = w.shape[0]
    Dp, Hp, Wp = D + 2, H + 2, W + 2

    Tout = H * Wp                                  # real output lanes per depth slab
    Tpad = _round_up(Tout, 128)                    # lane-aligned output slab width
    T_in = _round_up(Tpad + 2 * Wp + 2, 128)       # input slab width (covers max tap offset)
    K = 27 * Cin

    # ---- host-side layout prep (halo pad + HW flatten; layout plumbing) ----
    xp = jnp.pad(x, ((0, 0), (0, 0), (1, 1), (1, 1), (1, 1)))        # (B,Cin,Dp,Hp,Wp)
    xf = xp.reshape(B, Cin, Dp, Hp * Wp)
    xf = jnp.pad(xf, ((0, 0), (0, 0), (0, 0), (0, T_in - Hp * Wp)))
    xf = xf.reshape(B, Cin, Dp * T_in).astype(jnp.float32)

    # Weight matrix: K ordered as ((kd,kh,kw) major, Cin minor) to match staging.
    wmat = jnp.transpose(w, (0, 2, 3, 4, 1)).reshape(Cout, K).astype(jnp.float32)
    bias_col = b.reshape(Cout, 1).astype(jnp.float32)

    # Lanes with w in [W, Wp) or lane >= Tout are junk: masked from statistics,
    # cropped at the end.
    lane = jnp.arange(Tpad, dtype=jnp.int32)
    valid = ((lane < Tout) & ((lane % Wp) < W)).astype(jnp.float32).reshape(1, Tpad)

    # ---------- pass 1: conv 3x3x3 + bias + per-batch BN partial stats ----------
    def conv_stats_kernel(x0_ref, x1_ref, x2_ref, wk_ref, b_ref, m_ref,
                          y_ref, s_ref, rhs_ref, s1_ref, s2_ref):
        d = pl.program_id(1)

        # Stage the 27 taps: contiguous lane slices -> rows of the RHS scratch.
        for kd, xr in enumerate((x0_ref, x1_ref, x2_ref)):
            for kh in range(3):
                for kw in range(3):
                    t = (kd * 3 + kh) * 3 + kw
                    off = kh * Wp + kw
                    rhs_ref[t * Cin:(t + 1) * Cin, :] = xr[0, :, off:off + Tpad]

        # Single K = 27*Cin MXU contraction + conv bias.
        yb = jnp.dot(wk_ref[...], rhs_ref[...],
                     preferred_element_type=jnp.float32) + b_ref[...]
        y_ref[0] = yb                                                # (Cout, Tpad)

        # BN partial statistics: masked vector partials, reduced once per batch.
        @pl.when(d == 0)
        def _():
            s1_ref[...] = jnp.zeros_like(s1_ref)
            s2_ref[...] = jnp.zeros_like(s2_ref)

        ym = yb * m_ref[...]
        s1_ref[...] += ym
        s2_ref[...] += ym * yb

        @pl.when(d == pl.num_programs(1) - 1)
        def _():
            s_ref[0, :, 0:1] = jnp.sum(s1_ref[...], axis=-1, keepdims=True)
            s_ref[0, :, 1:2] = jnp.sum(s2_ref[...], axis=-1, keepdims=True)

    y_pad, stats = pl.pallas_call(
        conv_stats_kernel,
        out_shape=(jax.ShapeDtypeStruct((B, Cout, D * Tpad), jnp.float32),
                   jax.ShapeDtypeStruct((B, Cout, 2), jnp.float32)),
        grid=(B, D),
        in_specs=[
            pl.BlockSpec((1, Cin, T_in), lambda bi, di: (bi, 0, di)),      # kd = 0
            pl.BlockSpec((1, Cin, T_in), lambda bi, di: (bi, 0, di + 1)),  # kd = 1
            pl.BlockSpec((1, Cin, T_in), lambda bi, di: (bi, 0, di + 2)),  # kd = 2
            pl.BlockSpec((Cout, K), lambda bi, di: (0, 0)),
            pl.BlockSpec((Cout, 1), lambda bi, di: (0, 0)),
            pl.BlockSpec((1, Tpad), lambda bi, di: (0, 0)),
        ],
        out_specs=(pl.BlockSpec((1, Cout, Tpad), lambda bi, di: (bi, 0, di)),
                   pl.BlockSpec((1, Cout, 2), lambda bi, di: (bi, 0, 0))),
        scratch_shapes=[pltpu.VMEM((K, Tpad), jnp.float32),     # staged conv RHS
                        pltpu.VMEM((Cout, Tpad), jnp.float32),  # sum partials
                        pltpu.VMEM((Cout, Tpad), jnp.float32)], # sum-sq partials
        compiler_params=pltpu.CompilerParams(
            dimension_semantics=("parallel", "arbitrary")),
        cost_estimate=pl.CostEstimate(
            flops=2 * B * D * Cout * K * Tpad,
            transcendentals=0,
            bytes_accessed=4 * (3 * B * D * Cin * T_in
                                + B * D * Cout * Tpad + Cout * K + B * Cout * 2)),
    )(xf, xf, xf, wmat, bias_col, valid)

    # ---------- tiny O(Cout) reduction -> batch-norm scale / shift ----------
    n = float(B * D * H * W)
    ch_sum = jnp.sum(stats[:, :, 0], axis=0)
    ch_sq = jnp.sum(stats[:, :, 1], axis=0)
    mean = ch_sum / n
    var = jnp.maximum(ch_sq / n - mean * mean, 0.0)   # biased var, as F.batch_norm
    scale = (gamma * jax.lax.rsqrt(var + eps)).astype(jnp.float32)
    shift = (beta - mean * scale).astype(jnp.float32)

    # ---------- pass 2: fused BN affine + ELU, lane-chunked, in place ----------
    total = D * Tpad
    units = total // 128
    limit = max(1, (2 * 1024 * 1024) // (4 * Cout * 128))  # ~2 MB per buffer
    chunk_units = 1
    for cand in range(1, units + 1):                        # largest exact divisor
        if units % cand == 0 and cand <= limit:
            chunk_units = cand
    CHUNK = chunk_units * 128
    n_chunks = total // CHUNK

    def bn_elu_kernel(y_ref, a_ref, c_ref, o_ref):
        z = a_ref[...] * y_ref[0] + c_ref[...]               # (Cout, CHUNK)
        # ELU(alpha=1).  exp(min(z,0)) - 1 matches expm1(z) on the z<=0 branch to
        # ~1e-7 absolute; exp has a guaranteed Mosaic lowering.
        o_ref[0] = jnp.where(z > 0, z, jnp.exp(jnp.minimum(z, 0.0)) - 1.0)

    out_flat = pl.pallas_call(
        bn_elu_kernel,
        out_shape=jax.ShapeDtypeStruct((B, Cout, total), jnp.float32),
        grid=(B, n_chunks),
        in_specs=[
            pl.BlockSpec((1, Cout, CHUNK), lambda bi, ci: (bi, 0, ci)),
            pl.BlockSpec((Cout, 1), lambda bi, ci: (0, 0)),
            pl.BlockSpec((Cout, 1), lambda bi, ci: (0, 0)),
        ],
        out_specs=pl.BlockSpec((1, Cout, CHUNK), lambda bi, ci: (bi, 0, ci)),
        input_output_aliases={0: 0},                          # write in place over y
        compiler_params=pltpu.CompilerParams(
            dimension_semantics=("parallel", "parallel")),
        cost_estimate=pl.CostEstimate(
            flops=4 * B * Cout * total,
            transcendentals=B * Cout * total,
            bytes_accessed=8 * B * Cout * total),
    )(y_pad, scale.reshape(Cout, 1), shift.reshape(Cout, 1))

    # crop the Tpad / Wp padding lanes and restore (B, Cout, D, H, W)
    out = out_flat.reshape(B, Cout, D, Tpad)[..., :Tout]
    return out.reshape(B, Cout, D, H, Wp)[..., :W]


def conv_bn_elu_ref(x, w, b, gamma, beta, eps=1e-5):
    """Pure-JAX reference mirroring the PyTorch forward."""
    y = jax.lax.conv_general_dilated(
        x, w, window_strides=(1, 1, 1),
        padding=((1, 1), (1, 1), (1, 1)),
        dimension_numbers=('NCDHW', 'OIDHW', 'NCDHW'))
    y = y + b[None, :, None, None, None]
    mean = y.mean(axis=(0, 2, 3, 4), keepdims=True)
    var = y.var(axis=(0, 2, 3, 4), keepdims=True)        # biased variance
    z = (y - mean) * jax.lax.rsqrt(var + eps)
    z = z * gamma[None, :, None, None, None] + beta[None, :, None, None, None]
    return jnp.where(z > 0, z, jnp.expm1(z))              # ELU, alpha=1


if __name__ == "__main__":
    # Conv(inChans=4, outChans=8, elu=True) on a small, deliberately unaligned
    # volume (H*(W+2) = 140 -> padded to 256 lanes inside the kernel).
    B, Cin, Cout = 2, 4, 8
    D, H, W = 6, 10, 12

    key = jax.random.PRNGKey(0)
    kx, kw, kb, kg, ke = jax.random.split(key, 5)
    x = jax.random.normal(kx, (B, Cin, D, H, W), dtype=jnp.float32)
    w = jax.random.normal(kw, (Cout, Cin, 3, 3, 3), dtype=jnp.float32) * 0.1
    b = jax.random.normal(kb, (Cout,), dtype=jnp.float32) * 0.1
    gamma = 1.0 + 0.1 * jax.random.normal(kg, (Cout,), dtype=jnp.float32)
    beta = 0.1 * jax.random.normal(ke, (Cout,), dtype=jnp.float32)

    out = jax.jit(conv_bn_elu_forward)(x, w, b, gamma, beta)
    out = jax.block_until_ready(out)

    ref = conv_bn_elu_ref(x, w, b, gamma, beta)
    assert out.shape == (B, Cout, D, H, W)
    assert jnp.allclose(out, ref, rtol=1e-3, atol=1e-3), \
        float(jnp.max(jnp.abs(out - ref)))

    print("KERNEL_OK")
</pallas_src>

<mosaic_0001>
module attributes {stable_mosaic.version = 11 : i64} {
  func.func @conv_stats_kernel(%arg0: i32, %arg1: i32, %arg2: memref<1x4x384xf32, #tpu.memory_space<vmem>>, %arg3: memref<1x4x384xf32, #tpu.memory_space<vmem>>, %arg4: memref<1x4x384xf32, #tpu.memory_space<vmem>>, %arg5: memref<8x108xf32, #tpu.memory_space<vmem>>, %arg6: memref<8x1xf32, #tpu.memory_space<vmem>>, %arg7: memref<1x256xf32, #tpu.memory_space<vmem>>, %arg8: memref<1x8x256xf32, #tpu.memory_space<vmem>>, %arg9: memref<1x8x2xf32, #tpu.memory_space<vmem>>, %arg10: memref<108x256xf32, #tpu.memory_space<vmem>>, %arg11: memref<8x256xf32, #tpu.memory_space<vmem>>, %arg12: memref<8x256xf32, #tpu.memory_space<vmem>>) attributes {dimension_semantics = [#tpu.dimension_semantics<parallel>, #tpu.dimension_semantics<arbitrary>], iteration_bounds = array<i64: 2, 6>, scalar_prefetch = 0 : i64, scratch_operands = 3 : i64, tpu.core_type = #tpu.core_type<tc>, window_params = [{transform_indices = @transform_0, window_bounds = array<i64: 1, 4, 384>}, {transform_indices = @transform_1, window_bounds = array<i64: 1, 4, 384>}, {transform_indices = @transform_2, window_bounds = array<i64: 1, 4, 384>}, {pipeline_mode = #tpu.pipeline_mode<synchronous>, transform_indices = @transform_3, window_bounds = array<i64: 8, 108>}, {pipeline_mode = #tpu.pipeline_mode<synchronous>, transform_indices = @transform_4, window_bounds = array<i64: 8, 1>}, {pipeline_mode = #tpu.pipeline_mode<synchronous>, transform_indices = @transform_5, window_bounds = array<i64: 1, 256>}, {transform_indices = @transform_6, window_bounds = array<i64: 1, 8, 256>}, {transform_indices = @transform_7, window_bounds = array<i64: 1, 8, 2>}]} {
    %c0 = arith.constant 0 : index
    %c0_0 = arith.constant 0 : index
    %c0_1 = arith.constant 0 : index
    %0 = vector.load %arg2[%c0, %c0_0, %c0_1] : memref<1x4x384xf32, #tpu.memory_space<vmem>>, vector<1x4x256xf32>
    %1 = vector.shape_cast %0 : vector<1x4x256xf32> to vector<4x256xf32>
    %c0_2 = arith.constant 0 : index
    %c0_3 = arith.constant 0 : index
    %2 = vector.load %arg10[%c0_2, %c0_3] : memref<108x256xf32, #tpu.memory_space<vmem>>, vector<4x256xf32>
    tpu.vector_store %arg10[%c0_2, %c0_3], %1 {strides = array<i32>} : memref<108x256xf32, #tpu.memory_space<vmem>>, vector<4x256xf32>,
    %c0_4 = arith.constant 0 : index
    %c0_5 = arith.constant 0 : index
    %c1 = arith.constant 1 : index
    %3 = vector.load %arg2[%c0_4, %c0_5, %c1] : memref<1x4x384xf32, #tpu.memory_space<vmem>>, vector<1x4x256xf32>
    %4 = vector.shape_cast %3 : vector<1x4x256xf32> to vector<4x256xf32>
    %c4 = arith.constant 4 : index
    %c0_6 = arith.constant 0 : index
    %5 = vector.load %arg10[%c4, %c0_6] : memref<108x256xf32, #tpu.memory_space<vmem>>, vector<4x256xf32>
    tpu.vector_store %arg10[%c4, %c0_6], %4 {strides = array<i32>} : memref<108x256xf32, #tpu.memory_space<vmem>>, vector<4x256xf32>,
    %c0_7 = arith.constant 0 : index
    %c0_8 = arith.constant 0 : index
    %c2 = arith.constant 2 : index
    %6 = vector.load %arg2[%c0_7, %c0_8, %c2] : memref<1x4x384xf32, #tpu.memory_space<vmem>>, vector<1x4x256xf32>
    %7 = vector.shape_cast %6 : vector<1x4x256xf32> to vector<4x256xf32>
    %c8 = arith.constant 8 : index
    %c0_9 = arith.constant 0 : index
    %8 = vector.load %arg10[%c8, %c0_9] : memref<108x256xf32, #tpu.memory_space<vmem>>, vector<4x256xf32>
    tpu.vector_store %arg10[%c8, %c0_9], %7 {strides = array<i32>} : memref<108x256xf32, #tpu.memory_space<vmem>>, vector<4x256xf32>,
    %c0_10 = arith.constant 0 : index
    %c0_11 = arith.constant 0 : index
    %c14 = arith.constant 14 : index
    %9 = vector.load %arg2[%c0_10, %c0_11, %c14] : memref<1x4x384xf32, #tpu.memory_space<vmem>>, vector<1x4x256xf32>
    %10 = vector.shape_cast %9 : vector<1x4x256xf32> to vector<4x256xf32>
    %c12 = arith.constant 12 : index
    %c0_12 = arith.constant 0 : index
    %11 = vector.load %arg10[%c12, %c0_12] : memref<108x256xf32, #tpu.memory_space<vmem>>, vector<4x256xf32>
    tpu.vector_store %arg10[%c12, %c0_12], %10 {strides = array<i32>} : memref<108x256xf32, #tpu.memory_space<vmem>>, vector<4x256xf32>,
    %c0_13 = arith.constant 0 : index
    %c0_14 = arith.constant 0 : index
    %c15 = arith.constant 15 : index
    %12 = vector.load %arg2[%c0_13, %c0_14, %c15] : memref<1x4x384xf32, #tpu.memory_space<vmem>>, vector<1x4x256xf32>
    %13 = vector.shape_cast %12 : vector<1x4x256xf32> to vector<4x256xf32>
    %c16 = arith.constant 16 : index
    %c0_15 = arith.constant 0 : index
    %14 = vector.load %arg10[%c16, %c0_15] : memref<108x256xf32, #tpu.memory_space<vmem>>, vector<4x256xf32>
    tpu.vector_store %arg10[%c16, %c0_15], %13 {strides = array<i32>} : memref<108x256xf32, #tpu.memory_space<vmem>>, vector<4x256xf32>,
    %c0_16 = arith.constant 0 : index
    %c0_17 = arith.constant 0 : index
    %c16_18 = arith.constant 16 : index
    %15 = vector.load %arg2[%c0_16, %c0_17, %c16_18] : memref<1x4x384xf32, #tpu.memory_space<vmem>>, vector<1x4x256xf32>
    %16 = vector.shape_cast %15 : vector<1x4x256xf32> to vector<4x256xf32>
    %c20 = arith.constant 20 : index
    %c0_19 = arith.constant 0 : index
    %17 = vector.load %arg10[%c20, %c0_19] : memref<108x256xf32, #tpu.memory_space<vmem>>, vector<4x256xf32>
    tpu.vector_store %arg10[%c20, %c0_19], %16 {strides = array<i32>} : memref<108x256xf32, #tpu.memory_space<vmem>>, vector<4x256xf32>,
    %c0_20 = arith.constant 0 : index
    %c0_21 = arith.constant 0 : index
    %c28 = arith.constant 28 : index
    %18 = vector.load %arg2[%c0_20, %c0_21, %c28] : memref<1x4x384xf32, #tpu.memory_space<vmem>>, vector<1x4x256xf32>
    %19 = vector.shape_cast %18 : vector<1x4x256xf32> to vector<4x256xf32>
    %c24 = arith.constant 24 : index
    %c0_22 = arith.constant 0 : index
    %20 = vector.load %arg10[%c24, %c0_22] : memref<108x256xf32, #tpu.memory_space<vmem>>, vector<4x256xf32>
    tpu.vector_store %arg10[%c24, %c0_22], %19 {strides = array<i32>} : memref<108x256xf32, #tpu.memory_space<vmem>>, vector<4x256xf32>,
    %c0_23 = arith.constant 0 : index
    %c0_24 = arith.constant 0 : index
    %c29 = arith.constant 29 : index
    %21 = vector.load %arg2[%c0_23, %c0_24, %c29] : memref<1x4x384xf32, #tpu.memory_space<vmem>>, vector<1x4x256xf32>
    %22 = vector.shape_cast %21 : vector<1x4x256xf32> to vector<4x256xf32>
    %c28_25 = arith.constant 28 : index
    %c0_26 = arith.constant 0 : index
    %23 = vector.load %arg10[%c28_25, %c0_26] : memref<108x256xf32, #tpu.memory_space<vmem>>, vector<4x256xf32>
    tpu.vector_store %arg10[%c28_25, %c0_26], %22 {strides = array<i32>} : memref<108x256xf32, #tpu.memory_space<vmem>>, vector<4x256xf32>,
    %c0_27 = arith.constant 0 : index
    %c0_28 = arith.constant 0 : index
    %c30 = arith.constant 30 : index
    %24 = vector.load %arg2[%c0_27, %c0_28, %c30] : memref<1x4x384xf32, #tpu.memory_space<vmem>>, vector<1x4x256xf32>
    %25 = vector.shape_cast %24 : vector<1x4x256xf32> to vector<4x256xf32>
    %c32 = arith.constant 32 : index
    %c0_29 = arith.constant 0 : index
    %26 = vector.load %arg10[%c32, %c0_29] : memref<108x256xf32, #tpu.memory_space<vmem>>, vector<4x256xf32>
    tpu.vector_store %arg10[%c32, %c0_29], %25 {strides = array<i32>} : memref<108x256xf32, #tpu.memory_space<vmem>>, vector<4x256xf32>,
    %c0_30 = arith.constant 0 : index
    %c0_31 = arith.constant 0 : index
    %c0_32 = arith.constant 0 : index
    %27 = vector.load %arg3[%c0_30, %c0_31, %c0_32] : memref<1x4x384xf32, #tpu.memory_space<vmem>>, vector<1x4x256xf32>
    %28 = vector.shape_cast %27 : vector<1x4x256xf32> to vector<4x256xf32>
    %c36 = arith.constant 36 : index
    %c0_33 = arith.constant 0 : index
    %29 = vector.load %arg10[%c36, %c0_33] : memref<108x256xf32, #tpu.memory_space<vmem>>, vector<4x256xf32>
    tpu.vector_store %arg10[%c36, %c0_33], %28 {strides = array<i32>} : memref<108x256xf32, #tpu.memory_space<vmem>>, vector<4x256xf32>,
    %c0_34 = arith.constant 0 : index
    %c0_35 = arith.constant 0 : index
    %c1_36 = arith.constant 1 : index
    %30 = vector.load %arg3[%c0_34, %c0_35, %c1_36] : memref<1x4x384xf32, #tpu.memory_space<vmem>>, vector<1x4x256xf32>
    %31 = vector.shape_cast %30 : vector<1x4x256xf32> to vector<4x256xf32>
    %c40 = arith.constant 40 : index
    %c0_37 = arith.constant 0 : index
    %32 = vector.load %arg10[%c40, %c0_37] : memref<108x256xf32, #tpu.memory_space<vmem>>, vector<4x256xf32>
    tpu.vector_store %arg10[%c40, %c0_37], %31 {strides = array<i32>} : memref<108x256xf32, #tpu.memory_space<vmem>>, vector<4x256xf32>,
    %c0_38 = arith.constant 0 : index
    %c0_39 = arith.constant 0 : index
    %c2_40 = arith.constant 2 : index
    %33 = vector.load %arg3[%c0_38, %c0_39, %c2_40] : memref<1x4x384xf32, #tpu.memory_space<vmem>>, vector<1x4x256xf32>
    %34 = vector.shape_cast %33 : vector<1x4x256xf32> to vector<4x256xf32>
    %c44 = arith.constant 44 : index
    %c0_41 = arith.constant 0 : index
    %35 = vector.load %arg10[%c44, %c0_41] : memref<108x256xf32, #tpu.memory_space<vmem>>, vector<4x256xf32>
    tpu.vector_store %arg10[%c44, %c0_41], %34 {strides = array<i32>} : memref<108x256xf32, #tpu.memory_space<vmem>>, vector<4x256xf32>,
    %c0_42 = arith.constant 0 : index
    %c0_43 = arith.constant 0 : index
    %c14_44 = arith.constant 14 : index
    %36 = vector.load %arg3[%c0_42, %c0_43, %c14_44] : memref<1x4x384xf32, #tpu.memory_space<vmem>>, vector<1x4x256xf32>
    %37 = vector.shape_cast %36 : vector<1x4x256xf32> to vector<4x256xf32>
    %c48 = arith.constant 48 : index
    %c0_45 = arith.constant 0 : index
    %38 = vector.load %arg10[%c48, %c0_45] : memref<108x256xf32, #tpu.memory_space<vmem>>, vector<4x256xf32>
    tpu.vector_store %arg10[%c48, %c0_45], %37 {strides = array<i32>} : memref<108x256xf32, #tpu.memory_space<vmem>>, vector<4x256xf32>,
    %c0_46 = arith.constant 0 : index
    %c0_47 = arith.constant 0 : index
    %c15_48 = arith.constant 15 : index
    %39 = vector.load %arg3[%c0_46, %c0_47, %c15_48] : memref<1x4x384xf32, #tpu.memory_space<vmem>>, vector<1x4x256xf32>
    %40 = vector.shape_cast %39 : vector<1x4x256xf32> to vector<4x256xf32>
    %c52 = arith.constant 52 : index
    %c0_49 = arith.constant 0 : index
    %41 = vector.load %arg10[%c52, %c0_49] : memref<108x256xf32, #tpu.memory_space<vmem>>, vector<4x256xf32>
    tpu.vector_store %arg10[%c52, %c0_49], %40 {strides = array<i32>} : memref<108x256xf32, #tpu.memory_space<vmem>>, vector<4x256xf32>,
    %c0_50 = arith.constant 0 : index
    %c0_51 = arith.constant 0 : index
    %c16_52 = arith.constant 16 : index
    %42 = vector.load %arg3[%c0_50, %c0_51, %c16_52] : memref<1x4x384xf32, #tpu.memory_space<vmem>>, vector<1x4x256xf32>
    %43 = vector.shape_cast %42 : vector<1x4x256xf32> to vector<4x256xf32>
    %c56 = arith.constant 56 : index
    %c0_53 = arith.constant 0 : index
    %44 = vector.load %arg10[%c56, %c0_53] : memref<108x256xf32, #tpu.memory_space<vmem>>, vector<4x256xf32>
    tpu.vector_store %arg10[%c56, %c0_53], %43 {strides = array<i32>} : memref<108x256xf32, #tpu.memory_space<vmem>>, vector<4x256xf32>,
    %c0_54 = arith.constant 0 : index
    %c0_55 = arith.constant 0 : index
    %c28_56 = arith.constant 28 : index
    %45 = vector.load %arg3[%c0_54, %c0_55, %c28_56] : memref<1x4x384xf32, #tpu.memory_space<vmem>>, vector<1x4x256xf32>
    %46 = vector.shape_cast %45 : vector<1x4x256xf32> to vector<4x256xf32>
    %c60 = arith.constant 60 : index
    %c0_57 = arith.constant 0 : index
    %47 = vector.load %arg10[%c60, %c0_57] : memref<108x256xf32, #tpu.memory_space<vmem>>, vector<4x256xf32>
    tpu.vector_store %arg10[%c60, %c0_57], %46 {strides = array<i32>} : memref<108x256xf32, #tpu.memory_space<vmem>>, vector<4x256xf32>,
    %c0_58 = arith.constant 0 : index
    %c0_59 = arith.constant 0 : index
    %c29_60 = arith.constant 29 : index
    %48 = vector.load %arg3[%c0_58, %c0_59, %c29_60] : memref<1x4x384xf32, #tpu.memory_space<vmem>>, vector<1x4x256xf32>
    %49 = vector.shape_cast %48 : vector<1x4x256xf32> to vector<4x256xf32>
    %c64 = arith.constant 64 : index
    %c0_61 = arith.constant 0 : index
    %50 = vector.load %arg10[%c64, %c0_61] : memref<108x256xf32, #tpu.memory_space<vmem>>, vector<4x256xf32>
    tpu.vector_store %arg10[%c64, %c0_61], %49 {strides = array<i32>} : memref<108x256xf32, #tpu.memory_space<vmem>>, vector<4x256xf32>,
    %c0_62 = arith.constant 0 : index
    %c0_63 = arith.constant 0 : index
    %c30_64 = arith.constant 30 : index
    %51 = vector.load %arg3[%c0_62, %c0_63, %c30_64] : memref<1x4x384xf32, #tpu.memory_space<vmem>>, vector<1x4x256xf32>
    %52 = vector.shape_cast %51 : vector<1x4x256xf32> to vector<4x256xf32>
    %c68 = arith.constant 68 : index
    %c0_65 = arith.constant 0 : index
    %53 = vector.load %arg10[%c68, %c0_65] : memref<108x256xf32, #tpu.memory_space<vmem>>, vector<4x256xf32>
    tpu.vector_store %arg10[%c68, %c0_65], %52 {strides = array<i32>} : memref<108x256xf32, #tpu.memory_space<vmem>>, vector<4x256xf32>,
    %c0_66 = arith.constant 0 : index
    %c0_67 = arith.constant 0 : index
    %c0_68 = arith.constant 0 : index
    %54 = vector.load %arg4[%c0_66, %c0_67, %c0_68] : memref<1x4x384xf32, #tpu.memory_space<vmem>>, vector<1x4x256xf32>
    %55 = vector.shape_cast %54 : vector<1x4x256xf32> to vector<4x256xf32>
    %c72 = arith.constant 72 : index
    %c0_69 = arith.constant 0 : index
    %56 = vector.load %arg10[%c72, %c0_69] : memref<108x256xf32, #tpu.memory_space<vmem>>, vector<4x256xf32>
    tpu.vector_store %arg10[%c72, %c0_69], %55 {strides = array<i32>} : memref<108x256xf32, #tpu.memory_space<vmem>>, vector<4x256xf32>,
    %c0_70 = arith.constant 0 : index
    %c0_71 = arith.constant 0 : index
    %c1_72 = arith.constant 1 : index
    %57 = vector.load %arg4[%c0_70, %c0_71, %c1_72] : memref<1x4x384xf32, #tpu.memory_space<vmem>>, vector<1x4x256xf32>
    %58 = vector.shape_cast %57 : vector<1x4x256xf32> to vector<4x256xf32>
    %c76 = arith.constant 76 : index
    %c0_73 = arith.constant 0 : index
    %59 = vector.load %arg10[%c76, %c0_73] : memref<108x256xf32, #tpu.memory_space<vmem>>, vector<4x256xf32>
    tpu.vector_store %arg10[%c76, %c0_73], %58 {strides = array<i32>} : memref<108x256xf32, #tpu.memory_space<vmem>>, vector<4x256xf32>,
    %c0_74 = arith.constant 0 : index
    %c0_75 = arith.constant 0 : index
    %c2_76 = arith.constant 2 : index
    %60 = vector.load %arg4[%c0_74, %c0_75, %c2_76] : memref<1x4x384xf32, #tpu.memory_space<vmem>>, vector<1x4x256xf32>
    %61 = vector.shape_cast %60 : vector<1x4x256xf32> to vector<4x256xf32>
    %c80 = arith.constant 80 : index
    %c0_77 = arith.constant 0 : index
    %62 = vector.load %arg10[%c80, %c0_77] : memref<108x256xf32, #tpu.memory_space<vmem>>, vector<4x256xf32>
    tpu.vector_store %arg10[%c80, %c0_77], %61 {strides = array<i32>} : memref<108x256xf32, #tpu.memory_space<vmem>>, vector<4x256xf32>,
    %c0_78 = arith.constant 0 : index
    %c0_79 = arith.constant 0 : index
    %c14_80 = arith.constant 14 : index
    %63 = vector.load %arg4[%c0_78, %c0_79, %c14_80] : memref<1x4x384xf32, #tpu.memory_space<vmem>>, vector<1x4x256xf32>
    %64 = vector.shape_cast %63 : vector<1x4x256xf32> to vector<4x256xf32>
    %c84 = arith.constant 84 : index
    %c0_81 = arith.constant 0 : index
    %65 = vector.load %arg10[%c84, %c0_81] : memref<108x256xf32, #tpu.memory_space<vmem>>, vector<4x256xf32>
    tpu.vector_store %arg10[%c84, %c0_81], %64 {strides = array<i32>} : memref<108x256xf32, #tpu.memory_space<vmem>>, vector<4x256xf32>,
    %c0_82 = arith.constant 0 : index
    %c0_83 = arith.constant 0 : index
    %c15_84 = arith.constant 15 : index
    %66 = vector.load %arg4[%c0_82, %c0_83, %c15_84] : memref<1x4x384xf32, #tpu.memory_space<vmem>>, vector<1x4x256xf32>
    %67 = vector.shape_cast %66 : vector<1x4x256xf32> to vector<4x256xf32>
    %c88 = arith.constant 88 : index
    %c0_85 = arith.constant 0 : index
    %68 = vector.load %arg10[%c88, %c0_85] : memref<108x256xf32, #tpu.memory_space<vmem>>, vector<4x256xf32>
    tpu.vector_store %arg10[%c88, %c0_85], %67 {strides = array<i32>} : memref<108x256xf32, #tpu.memory_space<vmem>>, vector<4x256xf32>,
    %c0_86 = arith.constant 0 : index
    %c0_87 = arith.constant 0 : index
    %c16_88 = arith.constant 16 : index
    %69 = vector.load %arg4[%c0_86, %c0_87, %c16_88] : memref<1x4x384xf32, #tpu.memory_space<vmem>>, vector<1x4x256xf32>
    %70 = vector.shape_cast %69 : vector<1x4x256xf32> to vector<4x256xf32>
    %c92 = arith.constant 92 : index
    %c0_89 = arith.constant 0 : index
    %71 = vector.load %arg10[%c92, %c0_89] : memref<108x256xf32, #tpu.memory_space<vmem>>, vector<4x256xf32>
    tpu.vector_store %arg10[%c92, %c0_89], %70 {strides = array<i32>} : memref<108x256xf32, #tpu.memory_space<vmem>>, vector<4x256xf32>,
    %c0_90 = arith.constant 0 : index
    %c0_91 = arith.constant 0 : index
    %c28_92 = arith.constant 28 : index
    %72 = vector.load %arg4[%c0_90, %c0_91, %c28_92] : memref<1x4x384xf32, #tpu.memory_space<vmem>>, vector<1x4x256xf32>
    %73 = vector.shape_cast %72 : vector<1x4x256xf32> to vector<4x256xf32>
    %c96 = arith.constant 96 : index
    %c0_93 = arith.constant 0 : index
    %74 = vector.load %arg10[%c96, %c0_93] : memref<108x256xf32, #tpu.memory_space<vmem>>, vector<4x256xf32>
    tpu.vector_store %arg10[%c96, %c0_93], %73 {strides = array<i32>} : memref<108x256xf32, #tpu.memory_space<vmem>>, vector<4x256xf32>,
    %c0_94 = arith.constant 0 : index
    %c0_95 = arith.constant 0 : index
    %c29_96 = arith.constant 29 : index
    %75 = vector.load %arg4[%c0_94, %c0_95, %c29_96] : memref<1x4x384xf32, #tpu.memory_space<vmem>>, vector<1x4x256xf32>
    %76 = vector.shape_cast %75 : vector<1x4x256xf32> to vector<4x256xf32>
    %c100 = arith.constant 100 : index
    %c0_97 = arith.constant 0 : index
    %77 = vector.load %arg10[%c100, %c0_97] : memref<108x256xf32, #tpu.memory_space<vmem>>, vector<4x256xf32>
    tpu.vector_store %arg10[%c100, %c0_97], %76 {strides = array<i32>} : memref<108x256xf32, #tpu.memory_space<vmem>>, vector<4x256xf32>,
    %c0_98 = arith.constant 0 : index
    %c0_99 = arith.constant 0 : index
    %c30_100 = arith.constant 30 : index
    %78 = vector.load %arg4[%c0_98, %c0_99, %c30_100] : memref<1x4x384xf32, #tpu.memory_space<vmem>>, vector<1x4x256xf32>
    %79 = vector.shape_cast %78 : vector<1x4x256xf32> to vector<4x256xf32>
    %c104 = arith.constant 104 : index
    %c0_101 = arith.constant 0 : index
    %80 = vector.load %arg10[%c104, %c0_101] : memref<108x256xf32, #tpu.memory_space<vmem>>, vector<4x256xf32>
    tpu.vector_store %arg10[%c104, %c0_101], %79 {strides = array<i32>} : memref<108x256xf32, #tpu.memory_space<vmem>>, vector<4x256xf32>,
    %c0_102 = arith.constant 0 : index
    %c0_103 = arith.constant 0 : index
    %81 = vector.load %arg5[%c0_102, %c0_103] : memref<8x108xf32, #tpu.memory_space<vmem>>, vector<8x108xf32>
    %c0_104 = arith.constant 0 : index
    %c0_105 = arith.constant 0 : index
    %82 = vector.load %arg10[%c0_104, %c0_105] : memref<108x256xf32, #tpu.memory_space<vmem>>, vector<108x256xf32>
    %cst = arith.constant dense<0.000000e+00> : vector<8x256xf32>
    %83 = tpu.matmul %81, %82, %cst {dimension_numbers = #tpu.dot_dimension_numbers<[1], [0], [0], [1], [0, 0, 1, 1], [], []>} : vector<8x108xf32>, vector<108x256xf32>, vector<8x256xf32> -> vector<8x256xf32>
    %c0_106 = arith.constant 0 : index
    %c0_107 = arith.constant 0 : index
    %84 = vector.load %arg6[%c0_106, %c0_107] : memref<8x1xf32, #tpu.memory_space<vmem>>, vector<8x1xf32>
    %85 = vector.broadcast %84 : vector<8x1xf32> to vector<8x256xf32>
    %86 = arith.addf %83, %85 : vector<8x256xf32>
    %c0_108 = arith.constant 0 : index
    %c0_109 = arith.constant 0 : index
    %c0_110 = arith.constant 0 : index
    %87 = vector.load %arg8[%c0_108, %c0_109, %c0_110] : memref<1x8x256xf32, #tpu.memory_space<vmem>>, vector<1x8x256xf32>
    %88 = vector.shape_cast %87 : vector<1x8x256xf32> to vector<8x256xf32>
    %89 = vector.shape_cast %86 : vector<8x256xf32> to vector<1x8x256xf32>
    tpu.vector_store %arg8[%c0_108, %c0_109, %c0_110], %89 {strides = array<i32>} : memref<1x8x256xf32, #tpu.memory_space<vmem>>, vector<1x8x256xf32>,
    %c0_i32 = arith.constant 0 : i32
    %90 = arith.cmpi eq, %arg1, %c0_i32 : i32
    %91 = arith.extui %90 : i1 to i32
    %c0_i32_111 = arith.constant 0 : i32
    %92 = arith.cmpi ne, %91, %c0_i32_111 : i32
    scf.if %92 {
      %cst_123 = arith.constant 0.000000e+00 : f32
      %106 = vector.broadcast %cst_123 : f32 to vector<8x256xf32>
      %c0_124 = arith.constant 0 : index
      %c0_125 = arith.constant 0 : index
      %107 = vector.load %arg11[%c0_124, %c0_125] : memref<8x256xf32, #tpu.memory_space<vmem>>, vector<8x256xf32>
      tpu.vector_store %arg11[%c0_124, %c0_125], %106 {strides = array<i32>} : memref<8x256xf32, #tpu.memory_space<vmem>>, vector<8x256xf32>,
      %cst_126 = arith.constant 0.000000e+00 : f32
      %108 = vector.broadcast %cst_126 : f32 to vector<8x256xf32>
      %c0_127 = arith.constant 0 : index
      %c0_128 = arith.constant 0 : index
      %109 = vector.load %arg12[%c0_127, %c0_128] : memref<8x256xf32, #tpu.memory_space<vmem>>, vector<8x256xf32>
      tpu.vector_store %arg12[%c0_127, %c0_128], %108 {strides = array<i32>} : memref<8x256xf32, #tpu.memory_space<vmem>>, vector<8x256xf32>,
    } else {
    }
    %c0_112 = arith.constant 0 : index
    %c0_113 = arith.constant 0 : index
    %93 = vector.load %arg7[%c0_112, %c0_113] : memref<1x256xf32, #tpu.memory_space<vmem>>, vector<1x256xf32>
    %94 = vector.broadcast %93 : vector<1x256xf32> to vector<8x256xf32>
    %95 = arith.mulf %86, %94 : vector<8x256xf32>
    %c0_114 = arith.constant 0 : index
    %c0_115 = arith.constant 0 : index
    %96 = vector.load %arg11[%c0_114, %c0_115] : memref<8x256xf32, #tpu.memory_space<vmem>>, vector<8x256xf32>
    %97 = arith.addf %96, %95 : vector<8x256xf32>
    %c0_116 = arith.constant 0 : index
    %c0_117 = arith.constant 0 : index
    %98 = vector.load %arg11[%c0_116, %c0_117] : memref<8x256xf32, #tpu.memory_space<vmem>>, vector<8x256xf32>
    tpu.vector_store %arg11[%c0_116, %c0_117], %97 {strides = array<i32>} : memref<8x256xf32, #tpu.memory_space<vmem>>, vector<8x256xf32>,
    %c0_118 = arith.constant 0 : index
    %c0_119 = arith.constant 0 : index
    %99 = vector.load %arg12[%c0_118, %c0_119] : memref<8x256xf32, #tpu.memory_space<vmem>>, vector<8x256xf32>
    %100 = arith.mulf %95, %86 : vector<8x256xf32>
    %101 = arith.addf %99, %100 : vector<8x256xf32>
    %c0_120 = arith.constant 0 : index
    %c0_121 = arith.constant 0 : index
    %102 = vector.load %arg12[%c0_120, %c0_121] : memref<8x256xf32, #tpu.memory_space<vmem>>, vector<8x256xf32>
    tpu.vector_store %arg12[%c0_120, %c0_121], %101 {strides = array<i32>} : memref<8x256xf32, #tpu.memory_space<vmem>>, vector<8x256xf32>,
    %c5_i32 = arith.constant 5 : i32
    %103 = arith.cmpi eq, %arg1, %c5_i32 : i32
    %104 = arith.extui %103 : i1 to i32
    %c0_i32_122 = arith.constant 0 : i32
    %105 = arith.cmpi ne, %104, %c0_i32_122 : i32
    scf.if %105 {
      %c0_123 = arith.constant 0 : index
      %c0_124 = arith.constant 0 : index
      %106 = vector.load %arg11[%c0_123, %c0_124] : memref<8x256xf32, #tpu.memory_space<vmem>>, vector<8x256xf32>
      %cst_125 = arith.constant dense<0.000000e+00> : vector<8xf32>
      %107 = vector.multi_reduction <add>, %106, %cst_125 [1] : vector<8x256xf32> to vector<8xf32>
      %108 = vector.shape_cast %107 : vector<8xf32> to vector<8x1xf32>
      %c0_126 = arith.constant 0 : index
      %c0_127 = arith.constant 0 : index
      %c0_128 = arith.constant 0 : index
      %109 = vector.load %arg9[%c0_126, %c0_127, %c0_128] : memref<1x8x2xf32, #tpu.memory_space<vmem>>, vector<1x8x1xf32>
      %110 = vector.shape_cast %109 : vector<1x8x1xf32> to vector<8x1xf32>
      %111 = vector.shape_cast %108 : vector<8x1xf32> to vector<1x8x1xf32>
      tpu.vector_store %arg9[%c0_126, %c0_127, %c0_128], %111 {strides = array<i32>} : memref<1x8x2xf32, #tpu.memory_space<vmem>>, vector<1x8x1xf32>,
      %c0_129 = arith.constant 0 : index
      %c0_130 = arith.constant 0 : index
      %112 = vector.load %arg12[%c0_129, %c0_130] : memref<8x256xf32, #tpu.memory_space<vmem>>, vector<8x256xf32>
      %cst_131 = arith.constant dense<0.000000e+00> : vector<8xf32>
      %113 = vector.multi_reduction <add>, %112, %cst_131 [1] : vector<8x256xf32> to vector<8xf32>
      %114 = vector.shape_cast %113 : vector<8xf32> to vector<8x1xf32>
      %c0_132 = arith.constant 0 : index
      %c0_133 = arith.constant 0 : index
      %c1_134 = arith.constant 1 : index
      %115 = vector.load %arg9[%c0_132, %c0_133, %c1_134] : memref<1x8x2xf32, #tpu.memory_space<vmem>>, vector<1x8x1xf32>
      %116 = vector.shape_cast %115 : vector<1x8x1xf32> to vector<8x1xf32>
      %117 = vector.shape_cast %114 : vector<8x1xf32> to vector<1x8x1xf32>
      tpu.vector_store %arg9[%c0_132, %c0_133, %c1_134], %117 {strides = array<i32>} : memref<1x8x2xf32, #tpu.memory_space<vmem>>, vector<1x8x1xf32>,
    } else {
    }
    return
  }
  func.func @transform_0(%arg0: i32, %arg1: i32) -> (i32, i32, i32) {
    %c0_i32 = arith.constant 0 : i32
    %c0_i32_0 = arith.constant 0 : i32
    return %arg0, %c0_i32, %arg1 : i32, i32, i32
  }
  func.func @transform_1(%arg0: i32, %arg1: i32) -> (i32, i32, i32) {
    %c1_i32 = arith.constant 1 : i32
    %0 = arith.addi %arg1, %c1_i32 : i32
    %c0_i32 = arith.constant 0 : i32
    %c0_i32_0 = arith.constant 0 : i32
    return %arg0, %c0_i32, %0 : i32, i32, i32
  }
  func.func @transform_2(%arg0: i32, %arg1: i32) -> (i32, i32, i32) {
    %c2_i32 = arith.constant 2 : i32
    %0 = arith.addi %arg1, %c2_i32 : i32
    %c0_i32 = arith.constant 0 : i32
    %c0_i32_0 = arith.constant 0 : i32
    return %arg0, %c0_i32, %0 : i32, i32, i32
  }
  func.func @transform_3(%arg0: i32, %arg1: i32) -> (i32, i32) {
    %c0_i32 = arith.constant 0 : i32
    %c0_i32_0 = arith.constant 0 : i32
    %c0_i32_1 = arith.constant 0 : i32
    return %c0_i32, %c0_i32_0 : i32, i32
  }
  func.func @transform_4(%arg0: i32, %arg1: i32) -> (i32, i32) {
    %c0_i32 = arith.constant 0 : i32
    %c0_i32_0 = arith.constant 0 : i32
    %c0_i32_1 = arith.constant 0 : i32
    return %c0_i32, %c0_i32_0 : i32, i32
  }
  func.func @transform_5(%arg0: i32, %arg1: i32) -> (i32, i32) {
    %c0_i32 = arith.constant 0 : i32
    %c0_i32_0 = arith.constant 0 : i32
    %c0_i32_1 = arith.constant 0 : i32
    return %c0_i32, %c0_i32_0 : i32, i32
  }
  func.func @transform_6(%arg0: i32, %arg1: i32) -> (i32, i32, i32) {
    %c0_i32 = arith.constant 0 : i32
    %c0_i32_0 = arith.constant 0 : i32
    return %arg0, %c0_i32, %arg1 : i32, i32, i32
  }
  func.func @transform_7(%arg0: i32, %arg1: i32) -> (i32, i32, i32) {
    %c0_i32 = arith.constant 0 : i32
    %c0_i32_0 = arith.constant 0 : i32
    %c0_i32_1 = arith.constant 0 : i32
    return %arg0, %c0_i32, %c0_i32_0 : i32, i32, i32
  }
}

module attributes {stable_mosaic.version = 11 : i64} {
  func.func @bn_elu_kernel(%arg0: i32, %arg1: i32, %arg2: memref<1x8x1536xf32, #tpu.memory_space<vmem>>, %arg3: memref<8x1xf32, #tpu.memory_space<vmem>>, %arg4: memref<8x1xf32, #tpu.memory_space<vmem>>, %arg5: memref<1x8x1536xf32, #tpu.memory_space<vmem>>) attributes {dimension_semantics = [#tpu.dimension_semantics<parallel>, #tpu.dimension_semantics<parallel>], iteration_bounds = array<i64: 2, 1>, scalar_prefetch = 0 : i64, scratch_operands = 0 : i64, tpu.core_type = #tpu.core_type<tc>, window_params = [{transform_indices = @transform_0, window_bounds = array<i64: 1, 8, 1536>}, {pipeline_mode = #tpu.pipeline_mode<synchronous>, transform_indices = @transform_1, window_bounds = array<i64: 8, 1>}, {pipeline_mode = #tpu.pipeline_mode<synchronous>, transform_indices = @transform_2, window_bounds = array<i64: 8, 1>}, {transform_indices = @transform_3, window_bounds = array<i64: 1, 8, 1536>}]} {
    %c0 = arith.constant 0 : index
    %c0_0 = arith.constant 0 : index
    %0 = vector.load %arg3[%c0, %c0_0] : memref<8x1xf32, #tpu.memory_space<vmem>>, vector<8x1xf32>
    %c0_1 = arith.constant 0 : index
    %c0_2 = arith.constant 0 : index
    %c0_3 = arith.constant 0 : index
    %1 = vector.load %arg2[%c0_1, %c0_2, %c0_3] : memref<1x8x1536xf32, #tpu.memory_space<vmem>>, vector<1x8x1536xf32>
    %2 = vector.shape_cast %1 : vector<1x8x1536xf32> to vector<8x1536xf32>
    %3 = vector.broadcast %0 : vector<8x1xf32> to vector<8x1536xf32>
    %4 = arith.mulf %3, %2 : vector<8x1536xf32>
    %c0_4 = arith.constant 0 : index
    %c0_5 = arith.constant 0 : index
    %5 = vector.load %arg4[%c0_4, %c0_5] : memref<8x1xf32, #tpu.memory_space<vmem>>, vector<8x1xf32>
    %6 = vector.broadcast %5 : vector<8x1xf32> to vector<8x1536xf32>
    %7 = arith.addf %4, %6 : vector<8x1536xf32>
    %cst = arith.constant 0.000000e+00 : f32
    %8 = vector.broadcast %cst : f32 to vector<8x1536xf32>
    %9 = arith.cmpf ogt, %7, %8 : vector<8x1536xf32>
    %cst_6 = arith.constant 0.000000e+00 : f32
    %10 = vector.broadcast %cst_6 : f32 to vector<8x1536xf32>
    %11 = arith.minimumf %7, %10 : vector<8x1536xf32>
    %12 = math.exp %11 : vector<8x1536xf32>
    %cst_7 = arith.constant 1.000000e+00 : f32
    %13 = vector.broadcast %cst_7 : f32 to vector<8x1536xf32>
    %14 = arith.subf %12, %13 : vector<8x1536xf32>
    %15 = arith.select %9, %7, %14 : vector<8x1536xi1>, vector<8x1536xf32>
    %c0_8 = arith.constant 0 : index
    %c0_9 = arith.constant 0 : index
    %c0_10 = arith.constant 0 : index
    %16 = vector.load %arg5[%c0_8, %c0_9, %c0_10] : memref<1x8x1536xf32, #tpu.memory_space<vmem>>, vector<1x8x1536xf32>
    %17 = vector.shape_cast %16 : vector<1x8x1536xf32> to vector<8x1536xf32>
    %18 = vector.shape_cast %15 : vector<8x1536xf32> to vector<1x8x1536xf32>
    tpu.vector_store %arg5[%c0_8, %c0_9, %c0_10], %18 {strides = array<i32>} : memref<1x8x1536xf32, #tpu.memory_space<vmem>>, vector<1x8x1536xf32>,
    return
  }
  func.func @transform_0(%arg0: i32, %arg1: i32) -> (i32, i32, i32) {
    %c0_i32 = arith.constant 0 : i32
    %c0_i32_0 = arith.constant 0 : i32
    return %arg0, %c0_i32, %arg1 : i32, i32, i32
  }
  func.func @transform_1(%arg0: i32, %arg1: i32) -> (i32, i32) {
    %c0_i32 = arith.constant 0 : i32
    %c0_i32_0 = arith.constant 0 : i32
    %c0_i32_1 = arith.constant 0 : i32
    return %c0_i32, %c0_i32_0 : i32, i32
  }
  func.func @transform_2(%arg0: i32, %arg1: i32) -> (i32, i32) {
    %c0_i32 = arith.constant 0 : i32
    %c0_i32_0 = arith.constant 0 : i32
    %c0_i32_1 = arith.constant 0 : i32
    return %c0_i32, %c0_i32_0 : i32, i32
  }
  func.func @transform_3(%arg0: i32, %arg1: i32) -> (i32, i32, i32) {
    %c0_i32 = arith.constant 0 : i32
    %c0_i32_0 = arith.constant 0 : i32
    return %arg0, %c0_i32, %arg1 : i32, i32, i32
  }
}

</mosaic_0001>

<bundles_post_ra>
// kernel: conv_bn_elu_forward.3
= control target key start
LH: loop header
LB: loop body
LE: loop exit
PB: predicated region body
PF: predicated region fallthrough
CT: control target
= control target key end

     0   :  { %s546_s12 = smov 0   ;;  %s548_s13 = smov 0   ;;  %s666_s0 = inlined_call_operand.vmem [shape: f32[2,8,1536], index: 0, kind: input, shape index: {}, may-alias: {0,3}]   ;;  %s667_s1 = inlined_call_operand.vmem [shape: f32[8,1], index: 1, kind: input, shape index: {}]   ;;  %s668_s2 = inlined_call_operand.vmem [shape: f32[8,1], index: 2, kind: input, shape index: {}]   ;;  %s669_s3 = inlined_call_operand.vmem [shape: f32[2,8,1536], index: 3, kind: output, shape index: {}, may-alias: {0,3}]  }
   0x1   :  { %s550_s14 = smov 0  }
   0x2 LB: > { %s25_s15 = sadd.s32 1, %s519_s13  ;;  %p433_p0 = scmp.ge.s32.totalorder %s523_s14, 1  ;;  %s523_s14 = sphi %s550_s14, %s13_s14   ;;  %s519_s13 = sphi %s548_s13, %s671_s13   ;;  %s515_s12 = sphi %s546_s12, %s670_s12  }
   0x3   : > { %p27_p1 = scmp.ge.s32.totalorder %s25_s15, 2  ;;  %p158_p2 = scmp.lt.s32.totalorder %s523_s14, 3 }
   0x5   : > { %s673_s15 = smov (%p27_p1, %s25_s15), 0  ;;  %p159_p3 = pnand %p433_p0, %p158_p2 }
   0x6   : > { %v210_v0 = vld [vmem:[%s667_s1] sm:$0xff] (!%p159_p3)  ;;  %v525_v1 = vmov (!%p159_p3), 0   ;;  %p191_p4 = scmp.lt.s32.totalorder (!%p159_p3), %s515_s12, 1 }
   0x7   : > { %162 = sbr.rel (%p159_p3) target bundleno = 172 (0xac), region = 32  ;;  %476 = vset.pattern.permute.xlu0 (!%p159_p3), %v525_v1  ;;  %v240_v2 = vld [vmem:[%s668_s2] sm:$0xff] (!%p159_p3) }
   0x8   : > { %225 = vperm.xlu0 (!%p159_p3), %476, %v210_v0  }
   0xc   : > { %243 = vperm.xlu0 (!%p159_p3), %476, %v240_v2  }
   0xe   : > { %s675_s12 = smov (!%p191_p4, %s515_s12), 1 }
   0xf   : > { %s450_s20 = smul.u32 96, %s675_s12 }
  0x11   : > { %s198_s23 = scalar_lea.vmem %s666_s0, %s450_s20  ;;  %s619_s26 = scalar_lea.vmem %s669_s3, %s450_s20 }
  0x12   : > { %v211_v4 = vld [vmem:[%s198_s23] sm:$0xff]  ;;  %v212_v5 = vld [vmem:[%s198_s23 + $0x8] sm:$0xff]  ;;  %v213_v6 = vld [vmem:[%s198_s23 + $0x10] sm:$0xff] }
  0x13   : > { %v214_v7 = vld [vmem:[%s198_s23 + $0x18] sm:$0xff]  ;;  %v215_v8 = vld [vmem:[%s198_s23 + $0x20] sm:$0xff]  ;;  %v216_v9 = vld [vmem:[%s198_s23 + $0x28] sm:$0xff] }
  0x14   : > { %v217_v10 = vld [vmem:[%s198_s23 + $0x30] sm:$0xff]  ;;  %v218_v12 = vld [vmem:[%s198_s23 + $0x38] sm:$0xff]  ;;  %v219_v20 = vld [vmem:[%s198_s23 + $0x40] sm:$0xff] }
  0x15   : > { %v220_v21 = vld [vmem:[%s198_s23 + $0x48] sm:$0xff]  ;;  %v221_v28 = vld [vmem:[%s198_s23 + $0x50] sm:$0xff]  ;;  %v222_v31 = vld [vmem:[%s198_s23 + $0x58] sm:$0xff] }
  0x87   : > { %v226_v3 = vpop.permute.xlu0 %225 }
  0x88   : > { %v228_v13 = vmul.f32 %v226_v3, %v211_v4  ;;  %v229_v14 = vmul.f32 %v226_v3, %v212_v5  ;;  %v230_v15 = vmul.f32 %v226_v3, %v213_v6  ;;  %v231_v16 = vmul.f32 %v226_v3, %v214_v7 }
  0x89   : > { %v232_v17 = vmul.f32 %v226_v3, %v215_v8  ;;  %v233_v18 = vmul.f32 %v226_v3, %v216_v9  ;;  %v234_v19 = vmul.f32 %v226_v3, %v217_v10  ;;  %v235_v26 = vmul.f32 %v226_v3, %v218_v12 }
  0x8a   : > { %v236_v32 = vmul.f32 %v226_v3, %v219_v20  ;;  %v237_v33 = vmul.f32 %v226_v3, %v220_v21  ;;  %v238_v39 = vmul.f32 %v226_v3, %v221_v28  ;;  %v239_v42 = vmul.f32 %v226_v3, %v222_v31 }
  0x8b   : > { %v244_v11 = vpop.permute.xlu0 %243 }
  0x8c   : > { %v578_v22 = vadd.f32 %v244_v11, %v228_v13  ;;  %v580_v23 = vadd.f32 %v244_v11, %v229_v14  ;;  %v582_v24 = vadd.f32 %v244_v11, %v230_v15  ;;  %v584_v25 = vadd.f32 %v244_v11, %v231_v16 }
  0x8d   : > { %v586_v27 = vadd.f32 %v244_v11, %v232_v17  ;;  %v588_v29 = vadd.f32 %v244_v11, %v233_v18  ;;  %v590_v30 = vadd.f32 %v244_v11, %v234_v19  ;;  %v592_v34 = vadd.f32 %v244_v11, %v235_v26 }
  0x8e   : > { %v270_v35 = vmin.f32 %v578_v22, 0.0  ;;  %v271_v36 = vmin.f32 %v580_v23, 0.0  ;;  %v272_v37 = vmin.f32 %v582_v24, 0.0  ;;  %v273_v38 = vmin.f32 %v584_v25, 0.0 }
  0x8f   : > { %v598_v40 = vadd.f32 %v244_v11, %v236_v32  ;;  %v274_v41 = vmin.f32 %v586_v27, 0.0  ;;  %v601_v43 = vadd.f32 %v244_v11, %v237_v33  ;;  %v275_v44 = vmin.f32 %v588_v29, 0.0 }
  0x90   : > { %v276_v45 = vmin.f32 %v590_v30, 0.0  ;;  %v605_v46 = vadd.f32 %v244_v11, %v238_v39  ;;  %v282_v47 = vmul.f32 1.442695, %v270_v35  ;;  %v284_v48 = vmul.f32 1.442695, %v271_v36 }
  0x91   : > { %v286_v49 = vmul.f32 1.442695, %v272_v37  ;;  %v607_v50 = vadd.f32 %v244_v11, %v239_v42  ;;  %v277_v51 = vmin.f32 %v592_v34, 0.0  ;;  %v288_v52 = vmul.f32 1.442695, %v273_v38 }
  0x92   : > { %v278_v53 = vmin.f32 %v598_v40, 0.0  ;;  %477 = vpow2.f32 %v282_v47  ;;  %v290_v54 = vmul.f32 1.442695, %v274_v41  ;;  %v279_v55 = vmin.f32 %v601_v43, 0.0 }
  0x93   : > { %479 = vpow2.f32 %v284_v48  ;;  %v292_v56 = vmul.f32 1.442695, %v275_v44  ;;  %v280_v57 = vmin.f32 %v605_v46, 0.0  ;;  %v294_v58 = vmul.f32 1.442695, %v276_v45 }
  0x94   : > { %481 = vpow2.f32 %v286_v49  ;;  %v281_v59 = vmin.f32 %v607_v50, 0.0  ;;  %v296_v60 = vmul.f32 1.442695, %v277_v51  ;;  %v298_v61 = vmul.f32 1.442695, %v278_v53 }
  0x95   : > { %483 = vpow2.f32 %v288_v52  ;;  %v300_v62 = vmul.f32 1.442695, %v279_v55  ;;  %v302_v63 = vmul.f32 1.442695, %v280_v57  ;;  %vm258_vm0 = vcmp.gt.f32.partialorder %v578_v22, 0.0 }
  0x96   : > { %485 = vpow2.f32 %v290_v54  ;;  %v304_v0 = vmul.f32 1.442695, %v281_v59  ;;  %vm259_vm1 = vcmp.gt.f32.partialorder %v580_v23, 0.0  ;;  %vm260_vm2 = vcmp.gt.f32.partialorder %v582_v24, 0.0 }
  0x97   : > { %487 = vpow2.f32 %v292_v56  ;;  %vm261_vm3 = vcmp.gt.f32.partialorder %v584_v25, 0.0  ;;  %vm262_vm4 = vcmp.gt.f32.partialorder %v586_v27, 0.0  ;;  %vm263_vm5 = vcmp.gt.f32.partialorder %v588_v29, 0.0 }
  0x98   : > { %489 = vpow2.f32 %v294_v58  ;;  %vm264_vm6 = vcmp.gt.f32.partialorder %v590_v30, 0.0  ;;  %vm265_vm7 = vcmp.gt.f32.partialorder %v592_v34, 0.0  ;;  %vm266_vm8 = vcmp.gt.f32.partialorder %v598_v40, 0.0 }
  0x99   : > { %491 = vpow2.f32 %v296_v60  ;;  %vm267_vm9 = vcmp.gt.f32.partialorder %v601_v43, 0.0  ;;  %vm268_vm10 = vcmp.gt.f32.partialorder %v605_v46, 0.0  ;;  %vm269_vm11 = vcmp.gt.f32.partialorder %v607_v50, 0.0 }
  0x9a   : > { %493 = vpow2.f32 %v298_v61 }
  0x9b   : > { %495 = vpow2.f32 %v300_v62 }
  0x9c   : > { %v478_v1 = vpop.eup %477  ;;  %497 = vpow2.f32 %v302_v63 }
  0x9d   : > { %v480_v2 = vpop.eup %479  ;;  %499 = vpow2.f32 %v304_v0  ;;  %v436_v3 = vadd.f32 -1.0, %v478_v1 }
  0x9e   : > { %v482_v4 = vpop.eup %481  ;;  %v437_v5 = vadd.f32 -1.0, %v480_v2 }
  0x9f   : > { %v484_v6 = vpop.eup %483  ;;  %v438_v7 = vadd.f32 -1.0, %v482_v4  ;;  %v318_v8 = vsel %vm258_vm0, %v578_v22, %v436_v3 }
  0xa0   : > { %v486_v9 = vpop.eup %485  ;;  %v439_v10 = vadd.f32 -1.0, %v484_v6  ;;  %v319_v11 = vsel %vm259_vm1, %v580_v23, %v437_v5  ;;  %330 = vst [vmem:[%s619_s26] sm:$0xff] %v318_v8 }
  0xa1   : > { %v488_v12 = vpop.eup %487  ;;  %v440_v13 = vadd.f32 -1.0, %v486_v9  ;;  %v320_v14 = vsel %vm260_vm2, %v582_v24, %v438_v7  ;;  %331 = vst [vmem:[%s619_s26 + $0x8] sm:$0xff] %v319_v11 }
  0xa2   : > { %v490_v15 = vpop.eup %489  ;;  %v441_v16 = vadd.f32 -1.0, %v488_v12  ;;  %v321_v17 = vsel %vm261_vm3, %v584_v25, %v439_v10  ;;  %332 = vst [vmem:[%s619_s26 + $0x10] sm:$0xff] %v320_v14 }
  0xa3   : > { %v492_v18 = vpop.eup %491  ;;  %v442_v19 = vadd.f32 -1.0, %v490_v15  ;;  %v322_v20 = vsel %vm262_vm4, %v586_v27, %v440_v13  ;;  %333 = vst [vmem:[%s619_s26 + $0x18] sm:$0xff] %v321_v17 }
  0xa4   : > { %v494_v21 = vpop.eup %493  ;;  %v443_v22 = vadd.f32 -1.0, %v492_v18  ;;  %v323_v23 = vsel %vm263_vm5, %v588_v29, %v441_v16  ;;  %334 = vst [vmem:[%s619_s26 + $0x20] sm:$0xff] %v322_v20 }
  0xa5   : > { %v496_v24 = vpop.eup %495  ;;  %v444_v25 = vadd.f32 -1.0, %v494_v21  ;;  %v324_v26 = vsel %vm264_vm6, %v590_v30, %v442_v19  ;;  %335 = vst [vmem:[%s619_s26 + $0x28] sm:$0xff] %v323_v23 }
  0xa6   : > { %v498_v28 = vpop.eup %497  ;;  %v445_v27 = vadd.f32 -1.0, %v496_v24  ;;  %v325_v31 = vsel %vm265_vm7, %v592_v34, %v443_v22  ;;  %336 = vst [vmem:[%s619_s26 + $0x30] sm:$0xff] %v324_v26 }
  0xa7   : > { %v500_v29 = vpop.eup %499  ;;  %v446_v32 = vadd.f32 -1.0, %v498_v28  ;;  %v326_v33 = vsel %vm266_vm8, %v598_v40, %v444_v25  ;;  %337 = vst [vmem:[%s619_s26 + $0x38] sm:$0xff] %v325_v31 }
  0xa8   : > { %v447_v30 = vadd.f32 -1.0, %v500_v29  ;;  %v327_v35 = vsel %vm267_vm9, %v601_v43, %v445_v27  ;;  %338 = vst [vmem:[%s619_s26 + $0x40] sm:$0xff] %v326_v33 }
  0xa9   : > { %v328_v36 = vsel %vm268_vm10, %v605_v46, %v446_v32  ;;  %339 = vst [vmem:[%s619_s26 + $0x48] sm:$0xff] %v327_v35 }
  0xaa   : > { %v329_v34 = vsel %vm269_vm11, %v607_v50, %v447_v30  ;;  %340 = vst [vmem:[%s619_s26 + $0x50] sm:$0xff] %v328_v36 }
  0xab   : > { %341 = vst [vmem:[%s619_s26 + $0x58] sm:$0xff] %v329_v34 }
  0xac PF: > { %s13_s14 = sadd.s32 1, %s523_s14   ;;  %s670_s12 = smov %s519_s13 }
  0xad   : > { %p10_p5 = scmp.ge.s32.totalorder %s13_s14, 4   ;;  %s671_s13 = smov %s673_s15 }
  0xaf   :  { %12 = sbr.rel (!%p10_p5) target bundleno = 2 (0x2), region = 62 }

// kernel: conv_bn_elu_forward.2
= control target key start
LH: loop header
LB: loop body
LE: loop exit
PB: predicated region body
PF: predicated region fallthrough
CT: control target
= control target key end

     0   :  { %s1404_s24 = smov 0   ;;  %s1406_s25 = smov 0   ;;  %s1713_s0 = inlined_call_operand.vmem [shape: f32[2,4,3072], index: 0, kind: input, shape index: {}, may-alias: {0,1,2}]   ;;  %s1714_s1 = inlined_call_operand.vmem [shape: f32[2,4,3072], index: 1, kind: input, shape index: {}, may-alias: {0,1,2}]   ;;  %s1715_s2 = inlined_call_operand.vmem [shape: f32[2,4,3072], index: 2, kind: input, shape index: {}, may-alias: {0,1,2}]   ;;  %s1716_s3 = inlined_call_operand.vmem [shape: f32[8,108], index: 3, kind: input, shape index: {}]   ;;  %s1717_s4 = inlined_call_operand.vmem [shape: f32[8,1], index: 4, kind: input, shape index: {}]   ;;  %s1718_s5 = inlined_call_operand.vmem [shape: f32[1,256], index: 5, kind: input, shape index: {}]   ;;  %s1719_s6 = inlined_call_operand.vmem [shape: f32[2,8,1536], index: 6, kind: output, shape index: {0}]   ;;  %s1720_s7 = inlined_call_operand.vmem [shape: f32[2,8,2], index: 7, kind: output, shape index: {1}]  }
   0x1   :  { %s1408_s26 = smov 0   ;;  %s1410_s27 = smov 0  }
   0x2   :  { %s1412_s28 = smov 0  }
   0x3 LB: > { %s27_s29 = sadd.s32 1, %s1342_s26  ;;  %s30_s30 = sadd.s32 1, %s1346_s27  ;;  %s1350_s28 = sphi %s1412_s28, %s18_s28   ;;  %s1346_s27 = sphi %s1410_s27, %s1724_s27   ;;  %s1342_s26 = sphi %s1408_s26, %s1723_s26   ;;  %s1338_s25 = sphi %s1406_s25, %s1722_s25   ;;  %s1334_s24 = sphi %s1404_s24, %s1721_s24  }
   0x4   : > { %p28_p0 = scmp.ge.s32.totalorder %s27_s29, 6  ;;  %p1195_p1 = scmp.ge.s32.totalorder %s1350_s28, 1 }
   0x5   : > { %p303_p2 = scmp.lt.s32.totalorder %s1350_s28, 13 }
   0x6   : > { %s1726_s29 = smov (%p28_p0, %s27_s29), 0  ;;  %s1728_s30 = smov (!%p28_p0, %s30_s30), %s1346_s27 }
   0x7   : > { %p304_p3 = pnand %p1195_p1, %p303_p2  ;;  %p32_p4 = scmp.ge.s32.totalorder %s1728_s30, 2 }
   0x8   : > { %s367_s8 = smul.u32 (!%p304_p3), 3, %s1334_s24  ;;  %p368_p5 = scmp.lt.s32.totalorder (!%p304_p3), %s1338_s25, 1  ;;  %vm451_vm0 = vcmask (!%p304_p3), 1031168   ;;  %vm433_vm1 = vcmask (!%p304_p3), 1039360   ;;  %vm470_vm2 = vcmask (!%p304_p3), 932864   ;;  %vm488_vm3 = vcmask (!%p304_p3), 924672  }
   0x9   : > { %s1730_s30 = smov (%p32_p4, %s1728_s30), 0  ;;  %307 = sbr.rel (%p304_p3) target bundleno = 677 (0x2a5), region = 44 }
   0xa   : > { %p370_p6 = scmp.lt.s32.totalorder (!%p304_p3), %s367_s8, 23  ;;  %s1352_s19 = smov (!%p304_p3), 126   ;;  %vm507_vm4 = vcmask (!%p304_p3), 916480   ;;  %v1360_v60 = vmov (!%p304_p3), 0.0   ;;  %vm525_vm5 = vcmask (!%p304_p3), 818176   ;;  %v890_v62 = vld [vmem:[%s1717_s4] sm:$0xff] (!%p304_p3) }
   0xb   : > { %s1353_s20 = smov (!%p304_p3), 127   ;;  %s377_s21 = sadd.s32 (!%p304_p3), 1, %s1334_s24  ;;  %971 = vmatprep.mubr.f32.mxu0 (!%p304_p3), %v1360_v60  ;;  %vm544_vm6 = vcmask (!%p304_p3), 809984   ;;  %vm562_vm7 = vcmask (!%p304_p3), 801792   ;;  %vm900_vm8 = vcmask (!%p304_p3), 1043456   ;;  %vm1362_vm9 = vmmov (!%p304_p3), 1  }
   0xc   : > { %s389_s22 = sadd.s32 (!%p304_p3), 2, %s1334_s24  ;;  %s378_s23 = smul.u32 (!%p304_p3), 3, %s377_s21  ;;  %vm1234_vm10 = vmpackc.low (!%p304_p3), %vm900_vm8, %vm1362_vm9  ;;  %vm896_vm11 = vcmask (!%p304_p3), 883712  }
   0xd   : > { %s1199_s16 = sshll.u32 (!%p304_p3), %s1334_s24, 1  ;;  %p1205_p10 = scmp.ne.s32.totalorder (!%p304_p3), %s1334_s24, 0 }
   0xe   : > { %p381_p7 = scmp.lt.s32.totalorder (!%p304_p3), %s378_s23, 23  ;;  %p404_p9 = scmp.lt.s32.totalorder (!%p304_p3), %s1199_s16, 11 }
  0x10   : > { %s1732_s25 = smov (!%p368_p5, %s1338_s25), 1  ;;  %s1734_s8 = smov (!%p370_p6, %s367_s8), 23 }
  0x11   : > { %s1440_s9 = smul.u32 24, %s1732_s25  ;;  %s1201_s10 = sshll.u32 %s1732_s25, 3 }
  0x12   : > { %s1446_s13 = scalar_lea.vmem %s1720_s7, %s1201_s10  ;;  %s390_s10 = smul.u32 3, %s389_s22 }
  0x13   : > { %s373_s14 = sadd.s32 %s1440_s9, %s1734_s8  ;;  %s1354_s8 = smov 114  }
  0x14   : > { %s1196_s15 = sshll.u32 %s373_s14, 2  ;;  %p393_p8 = scmp.lt.s32.totalorder %s390_s10, 23 }
  0x15   : > { %s1452_s18 = scalar_lea.vmem %s1713_s0, %s1196_s15  ;;  %s1736_s23 = smov (!%p381_p7, %s378_s23), 23 }
  0x16   : > { %v441_v0 = vld [vmem:[%s1452_s18 + $0x8] sm:$0xf]  ;;  %v1456_v1 = vld [vmem:[%s1452_s18] sm:$0xff]  ;;  %s1738_s10 = smov (!%p393_p8, %s390_s10), 23  ;;  %s384_s11 = sadd.s32 %s1440_s9, %s1736_s23 }
  0x17   : > { %449 = vrot.lane.b32.xlu1 %v441_v0, %s1352_s19  ;;  %429 = vrot.lane.b32.xlu0 %v1456_v1, %s1353_s20  ;;  %v444_v2 = vcombine.high %v1456_v1, %v1456_v1  ;;  %419 = vst [vmem:[#allocation2] sm:$0xf] %v1456_v1  ;;  %v1296_v3 = vld [vmem:[%s1452_s18 + $0x8] ss:$0 sps:$4 sm:$0xff]   ;;  %v425_v4 = vcombine.low %v1456_v1, %v1456_v1  ;;  %s1197_s12 = sshll.u32 %s384_s11, 2  ;;  %s396_s14 = sadd.s32 %s1440_s9, %s1738_s10 }
  0x18   : > { %v1297_v5 = vld [vmem:[%s1452_s18 + $0x8] ss:$0 sps:$4 sm:$0xff]   ;;  %s1481_s17 = scalar_lea.vmem %s1714_s1, %s1197_s12  ;;  %s1198_s21 = sshll.u32 %s396_s14, 2 }
  0x19   : > { %420 = vst [vmem:[#allocation2 + $0x8] sm:$0xf] %v444_v2  ;;  %v1486_v6 = vld [vmem:[%s1481_s17] sm:$0xff]  ;;  %s1496_s23 = scalar_lea.vmem %s1715_s2, %s1198_s21  ;;  %s1355_s10 = smov 113   ;;  %v478_v8 = vld [vmem:[%s1452_s18 + $0x8] sm:$0xf] }
  0x1a   : > { %v1490_v7 = vcombine.low %v1486_v6, %v1486_v6  ;;  %574 = vst [vmem:[#allocation2 + $0x48] sm:$0xf0] %v1486_v6  ;;  %v1503_v9 = vld [vmem:[%s1496_s23] sm:$0xff]  ;;  %s1356_s11 = smov 112   ;;  %v1298_v11 = vld [vmem:[%s1452_s18 + $0x8] ss:$0 sps:$4 sm:$0xff]   ;;  %v579_v14 = vcombine.high %v1486_v6, %v1486_v6 }
  0x1b   : > { %445 = vrot.lane.b32.xlu1 %v1456_v1, %s1352_s19  ;;  %466 = vrot.lane.b32.xlu0 %v1456_v1, %s1354_s8  ;;  %v1507_v10 = vcombine.high %v1503_v9, %v1503_v9  ;;  %719 = vst [vmem:[#allocation2 + $0x90] sm:$0xf] %v1503_v9  ;;  %s1357_s12 = smov 100   ;;  %v515_v12 = vld [vmem:[%s1452_s18 + $0x8] sm:$0xf]  ;;  %s1358_s14 = smov 99   ;;  %v1582_v25 = vcombine.low %v1503_v9, %v1503_v9 }
  0x1c   : > { %573 = vst [vmem:[#allocation2 + $0x40] sm:$0xf0] %v1490_v7  ;;  %v1299_v13 = vld [vmem:[%s1452_s18 + $0x8] ss:$0 sps:$4 sm:$0xff]   ;;  %s1359_s15 = smov 98   ;;  %s1740_s16 = smov (!%p404_p9, %s1199_s16), 11 }
  0x1d   : > { %720 = vst [vmem:[#allocation2 + $0x98] sm:$0xf] %v1507_v10  ;;  %v552_v15 = vld [vmem:[%s1452_s18 + $0x8] sm:$0xf] }
  0x1e   : > { %v576_v16 = vld [vmem:[%s1481_s17 + $0x8] sm:$0xf] }
  0x1f   : > { %447 = vrot.lane.b32.xlu1 %v444_v2, %s1352_s19  ;;  %431 = vrot.lane.b32.xlu0 %v1296_v3, %s1353_s20  ;;  %v1302_v17 = vld [vmem:[%s1481_s17 + $0x8] ss:$0 sps:$4 sm:$0xff]  }
  0x20   : > { %v611_v18 = vld [vmem:[%s1481_s17 + $0x8] sm:$0xf] }
  0x21   : > { %v1303_v19 = vld [vmem:[%s1481_s17 + $0x8] ss:$0 sps:$4 sm:$0xff]  }
  0x22   : > { %v646_v20 = vld [vmem:[%s1481_s17 + $0x8] sm:$0xf] }
  0x23   : > { %468 = vrot.lane.b32.xlu1 %v1297_v5, %s1354_s8  ;;  %427 = vrot.lane.b32.xlu0 %v425_v4, %s1353_s20  ;;  %v1304_v21 = vld [vmem:[%s1481_s17 + $0x8] ss:$0 sps:$4 sm:$0xff]  }
  0x24   : > { %v681_v22 = vld [vmem:[%s1481_s17 + $0x8] sm:$0xf] }
  0x25   : > { %v1305_v23 = vld [vmem:[%s1481_s17 + $0x8] ss:$0 sps:$4 sm:$0xff]   ;;  %s1240_s17 = smul.u32 12, %s1732_s25 }
  0x26   : > { %v1306_v24 = vld [vmem:[%s1496_s23 + $0x8] ss:$0 sps:$4 sm:$0xff]  }
  0x27   : > { %484 = vrot.lane.b32.xlu1 %v444_v2, %s1355_s10  ;;  %464 = vrot.lane.b32.xlu0 %v425_v4, %s1354_s8  ;;  %v740_v26 = vld [vmem:[%s1496_s23 + $0x8] sm:$0xf]  ;;  %s407_s21 = sadd.s32 %s1240_s17, %s1740_s16 }
  0x28   : > { %v1309_v27 = vld [vmem:[%s1496_s23 + $0x8] ss:$0 sps:$4 sm:$0xff]   ;;  %s1200_s9 = sshll.u32 %s407_s21, 3 }
  0x29   : > { %v775_v28 = vld [vmem:[%s1496_s23 + $0x8] sm:$0xf] }
  0x2a   : > { %v1310_v29 = vld [vmem:[%s1496_s23 + $0x8] ss:$0 sps:$4 sm:$0xff]  }
  0x2b   : > { %503 = vrot.lane.b32.xlu1 %v1456_v1, %s1356_s11  ;;  %486 = vrot.lane.b32.xlu0 %v478_v8, %s1355_s10  ;;  %v810_v39 = vld [vmem:[%s1496_s23 + $0x8] sm:$0xf] }
  0x2c   : > { %v1311_v44 = vld [vmem:[%s1496_s23 + $0x8] ss:$0 sps:$4 sm:$0xff]  }
  0x2d   : > { %v845_v48 = vld [vmem:[%s1496_s23 + $0x8] sm:$0xf] }
  0x2f   : > { %521 = vrot.lane.b32.xlu1 %v444_v2, %s1357_s12  ;;  %505 = vrot.lane.b32.xlu0 %v1298_v11, %s1356_s11 }
  0x33   : > { %540 = vrot.lane.b32.xlu1 %v1456_v1, %s1358_s14  ;;  %523 = vrot.lane.b32.xlu0 %v515_v12, %s1357_s12 }
  0x37   : > { %482 = vrot.lane.b32.xlu1 %v1456_v1, %s1355_s10  ;;  %542 = vrot.lane.b32.xlu0 %v1299_v13, %s1358_s14 }
  0x3b   : > { %519 = vrot.lane.b32.xlu1 %v1456_v1, %s1357_s12  ;;  %501 = vrot.lane.b32.xlu0 %v425_v4, %s1356_s11 }
  0x3f   : > { %558 = vrot.lane.b32.xlu1 %v444_v2, %s1359_s15  ;;  %538 = vrot.lane.b32.xlu0 %v425_v4, %s1358_s14 }
  0x43   : > { %582 = vrot.lane.b32.xlu1 %v579_v14, %s1353_s20  ;;  %560 = vrot.lane.b32.xlu0 %v552_v15, %s1359_s15 }
  0x47   : > { %600 = vrot.lane.b32.xlu1 %v1486_v6, %s1352_s19  ;;  %584 = vrot.lane.b32.xlu0 %v576_v16, %s1353_s20 }
  0x4b   : > { %556 = vrot.lane.b32.xlu1 %v1456_v1, %s1359_s15  ;;  %602 = vrot.lane.b32.xlu0 %v1302_v17, %s1352_s19  ;;  %v1361_v1 = vmov 0  }
  0x4c   : > { %1293 = vset.pattern.permute.xlu0 %v1361_v1 }
  0x4f   : > { %598 = vrot.lane.b32.xlu1 %v1490_v7, %s1352_s19  ;;  %580 = vrot.lane.b32.xlu0 %v1486_v6, %s1353_s20 }
  0x53   : > { %619 = vrot.lane.b32.xlu1 %v611_v18, %s1354_s8  ;;  %617 = vrot.lane.b32.xlu0 %v579_v14, %s1354_s8 }
  0x57   : > { %637 = vrot.lane.b32.xlu1 %v1303_v19, %s1355_s10  ;;  %635 = vrot.lane.b32.xlu0 %v1486_v6, %s1355_s10 }
  0x5b   : > { %654 = vrot.lane.b32.xlu1 %v646_v20, %s1356_s11  ;;  %652 = vrot.lane.b32.xlu0 %v579_v14, %s1356_s11 }
  0x5f   : > { %672 = vrot.lane.b32.xlu1 %v1304_v21, %s1357_s12  ;;  %670 = vrot.lane.b32.xlu0 %v1486_v6, %s1357_s12 }
  0x63   : > { %633 = vrot.lane.b32.xlu1 %v1490_v7, %s1355_s10  ;;  %615 = vrot.lane.b32.xlu0 %v1486_v6, %s1354_s8 }
  0x67   : > { %668 = vrot.lane.b32.xlu1 %v1490_v7, %s1357_s12  ;;  %650 = vrot.lane.b32.xlu0 %v1486_v6, %s1356_s11 }
  0x6b   : > { %689 = vrot.lane.b32.xlu1 %v681_v22, %s1358_s14  ;;  %687 = vrot.lane.b32.xlu0 %v579_v14, %s1358_s14 }
  0x6f   : > { %707 = vrot.lane.b32.xlu1 %v1305_v23, %s1359_s15  ;;  %705 = vrot.lane.b32.xlu0 %v1486_v6, %s1359_s15 }
  0x73   : > { %731 = vrot.lane.b32.xlu1 %v1306_v24, %s1353_s20  ;;  %729 = vrot.lane.b32.xlu0 %v1503_v9, %s1353_s20 }
  0x77   : > { %703 = vrot.lane.b32.xlu1 %v1490_v7, %s1359_s15  ;;  %685 = vrot.lane.b32.xlu0 %v1486_v6, %s1358_s14 }
  0x7b   : > { %746 = vrot.lane.b32.xlu1 %v1507_v10, %s1352_s19  ;;  %727 = vrot.lane.b32.xlu0 %v1582_v25, %s1353_s20 }
  0x7f   : > { %764 = vrot.lane.b32.xlu1 %v1503_v9, %s1354_s8  ;;  %748 = vrot.lane.b32.xlu0 %v740_v26, %s1352_s19 }
  0x83   : > { %781 = vrot.lane.b32.xlu1 %v1507_v10, %s1355_s10  ;;  %766 = vrot.lane.b32.xlu0 %v1309_v27, %s1354_s8 }
  0x87   : > { %799 = vrot.lane.b32.xlu1 %v1503_v9, %s1356_s11  ;;  %783 = vrot.lane.b32.xlu0 %v775_v28, %s1355_s10 }
  0x89   : > { %v450_v30 = vpop.permute.xlu1 %449  ;;  %v430_v31 = vpop.permute.xlu0 %429 }
  0x8b   : > { %744 = vrot.lane.b32.xlu1 %v1503_v9, %s1352_s19  ;;  %801 = vrot.lane.b32.xlu0 %v1310_v29, %s1356_s11 }
  0x8d   : > { %v446_v32 = vpop.permute.xlu1 %445  ;;  %v467_v33 = vpop.permute.xlu0 %466 }
  0x8f   : > { %779 = vrot.lane.b32.xlu1 %v1503_v9, %s1355_s10  ;;  %762 = vrot.lane.b32.xlu0 %v1582_v25, %s1354_s8  ;;  %s409_s10 = scalar_lea.vmem %s1719_s6, %s1200_s9 }
  0x91   : > { %v448_v34 = vpop.permute.xlu1 %447  ;;  %v432_v35 = vpop.permute.xlu0 %431 }
  0x92   : > { %v452_v36 = vsel %vm451_vm0, %v446_v32, %v448_v34  ;;  %v453_v37 = vsel %vm451_vm0, %v448_v34, %v450_v30  ;;  %v435_v38 = vsel %vm433_vm1, %v430_v31, %v432_v35 }
  0x93   : > { %456 = vst [vmem:[#allocation2 + $0x10] sm:$0xf] %v452_v36  ;;  %457 = vst [vmem:[#allocation2 + $0x18] sm:$0xf] %v453_v37  ;;  %816 = vrot.lane.b32.xlu1 %v1507_v10, %s1357_s12  ;;  %797 = vrot.lane.b32.xlu0 %v1582_v25, %s1356_s11 }
  0x94   : > { %439 = vst [vmem:[#allocation2 + $0x8] sm:$0xf0] %v435_v38 }
  0x95   : > { %v469_v40 = vpop.permute.xlu1 %468  ;;  %v428_v41 = vpop.permute.xlu0 %427 }
  0x96   : > { %v472_v42 = vsel %vm470_vm2, %v467_v33, %v469_v40  ;;  %v434_v43 = vsel %vm433_vm1, %v428_v41, %v430_v31 }
  0x97   : > { %476 = vst [vmem:[#allocation2 + $0x18] sm:$0xf0] %v472_v42  ;;  %438 = vst [vmem:[#allocation2] sm:$0xf0] %v434_v43  ;;  %834 = vrot.lane.b32.xlu1 %v1503_v9, %s1358_s14  ;;  %818 = vrot.lane.b32.xlu0 %v810_v39, %s1357_s12 }
  0x99   : > { %v485_v45 = vpop.permute.xlu1 %484  ;;  %v465_v46 = vpop.permute.xlu0 %464 }
  0x9a   : > { %v471_v47 = vsel %vm470_vm2, %v465_v46, %v467_v33 }
  0x9b   : > { %475 = vst [vmem:[#allocation2 + $0x10] sm:$0xf0] %v471_v47  ;;  %851 = vrot.lane.b32.xlu1 %v1507_v10, %s1359_s15  ;;  %836 = vrot.lane.b32.xlu0 %v1311_v44, %s1358_s14  ;;  %v863_v52 = vld [vmem:[#allocation2 + $0x8] sm:$0xff] }
  0x9d   : > { %v504_v49 = vpop.permute.xlu1 %503  ;;  %v487_v50 = vpop.permute.xlu0 %486 }
  0x9e   : > { %v490_v51 = vsel %vm488_vm3, %v485_v45, %v487_v50  ;;  %v865_v53 = vld [vmem:[#allocation2 + $0x18] sm:$0xff]  ;;  %v862_v58 = vld [vmem:[#allocation2] sm:$0xff] }
  0x9f   : > { %494 = vst [vmem:[#allocation2 + $0x28] sm:$0xf] %v490_v51  ;;  %814 = vrot.lane.b32.xlu1 %v1503_v9, %s1357_s12  ;;  %853 = vrot.lane.b32.xlu0 %v845_v48, %s1359_s15  ;;  %v1209_v54 = vpack.c.bf16 %v865_v53, %v863_v52 }
  0xa1   : > { %v522_v55 = vpop.permute.xlu1 %521  ;;  %v506_v56 = vpop.permute.xlu0 %505  ;;  %1210 = vmatprep.subr.bf16.mxu0 %v1209_v54 }
  0xa2   : > { %v509_v57 = vsel %vm507_vm4, %v504_v49, %v506_v56  ;;  %v864_v59 = vld [vmem:[#allocation2 + $0x10] sm:$0xff] }
  0xa3   : > { %513 = vst [vmem:[#allocation2 + $0x28] sm:$0xf0] %v509_v57  ;;  %849 = vrot.lane.b32.xlu1 %v1503_v9, %s1359_s15  ;;  %832 = vrot.lane.b32.xlu0 %v1582_v25, %s1358_s14  ;;  %v1211_v61 = vpack.c.bf16 %v864_v59, %v862_v58 }
  0xa5   : > { %v541_v63 = vpop.permute.xlu1 %540  ;;  %v524_v0 = vpop.permute.xlu0 %523  ;;  %1212 = vmatpush1.bf16.msra.mxu0 %v1211_v61 }
  0xa6   : > { %v527_v2 = vsel %vm525_vm5, %v522_v55, %v524_v0 }
  0xa7   : > { %531 = vst [vmem:[#allocation2 + $0x38] sm:$0xf] %v527_v2  ;;  %893 = vperm.xlu0 %1293, %v890_v62  }
  0xa9   : > { %v483_v3 = vpop.permute.xlu1 %482  ;;  %v543_v4 = vpop.permute.xlu0 %542 }
  0xaa   : > { %v489_v5 = vsel %vm488_vm3, %v483_v3, %v485_v45  ;;  %v546_v6 = vsel %vm544_vm6, %v541_v63, %v543_v4  ;;  %v867_v14 = vld [vmem:[#allocation2 + $0x28] sm:$0xff] }
  0xab   : > { %493 = vst [vmem:[#allocation2 + $0x20] sm:$0xf] %v489_v5  ;;  %550 = vst [vmem:[#allocation2 + $0x38] sm:$0xf0] %v546_v6 }
  0xad   : > { %v520_v7 = vpop.permute.xlu1 %519  ;;  %v502_v8 = vpop.permute.xlu0 %501 }
  0xae   : > { %v526_v9 = vsel %vm525_vm5, %v520_v7, %v522_v55  ;;  %v508_v10 = vsel %vm507_vm4, %v502_v8, %v504_v49 }
  0xaf   : > { %530 = vst [vmem:[#allocation2 + $0x30] sm:$0xf] %v526_v9  ;;  %512 = vst [vmem:[#allocation2 + $0x20] sm:$0xf0] %v508_v10 }
  0xb1   : > { %v559_v11 = vpop.permute.xlu1 %558  ;;  %v539_v12 = vpop.permute.xlu0 %538 }
  0xb2   : > { %v545_v13 = vsel %vm544_vm6, %v539_v12, %v541_v63  ;;  %v869_v15 = vld [vmem:[#allocation2 + $0x38] sm:$0xff] }
  0xb3   : > { %549 = vst [vmem:[#allocation2 + $0x30] sm:$0xf0] %v545_v13  ;;  %v1213_v16 = vpack.c.bf16 %v869_v15, %v867_v14 }
  0xb5   : > { %v583_v17 = vpop.permute.xlu1 %582  ;;  %v561_v18 = vpop.permute.xlu0 %560  ;;  %1214 = vmatprep.subr.bf16.mxu0 %v1213_v16 }
  0xb6   : > { %v564_v19 = vsel %vm562_vm7, %v559_v11, %v561_v18  ;;  %v866_v23 = vld [vmem:[#allocation2 + $0x20] sm:$0xff] }
  0xb7   : > { %568 = vst [vmem:[#allocation2 + $0x48] sm:$0xf] %v564_v19 }
  0xb9   : > { %v601_v20 = vpop.permute.xlu1 %600  ;;  %v585_v21 = vpop.permute.xlu0 %584 }
  0xba   : > { %v587_v22 = vsel %vm433_vm1, %v583_v17, %v585_v21  ;;  %v868_v24 = vld [vmem:[#allocation2 + $0x30] sm:$0xff] }
  0xbb   : > { %591 = vst [vmem:[#allocation2 + $0x58] sm:$0xf] %v587_v22  ;;  %v1215_v25 = vpack.c.bf16 %v868_v24, %v866_v23 }
  0xbd   : > { %v557_v26 = vpop.permute.xlu1 %556  ;;  %v603_v27 = vpop.permute.xlu0 %602  ;;  %1216 = vmatpush1.bf16.msra.mxu0 %v1215_v25 }
  0xbe   : > { %v563_v28 = vsel %vm562_vm7, %v557_v26, %v559_v11  ;;  %v605_v29 = vsel %vm451_vm0, %v601_v20, %v603_v27  ;;  %v871_v37 = vld [vmem:[#allocation2 + $0x48] sm:$0xff] }
  0xbf   : > { %567 = vst [vmem:[#allocation2 + $0x40] sm:$0xf] %v563_v28  ;;  %609 = vst [vmem:[#allocation2 + $0x58] sm:$0xf0] %v605_v29 }
  0xc1   : > { %v599_v30 = vpop.permute.xlu1 %598  ;;  %v581_v31 = vpop.permute.xlu0 %580 }
  0xc2   : > { %v604_v32 = vsel %vm451_vm0, %v599_v30, %v601_v20  ;;  %v586_v33 = vsel %vm433_vm1, %v581_v31, %v583_v17 }
  0xc3   : > { %608 = vst [vmem:[#allocation2 + $0x50] sm:$0xf0] %v604_v32  ;;  %590 = vst [vmem:[#allocation2 + $0x50] sm:$0xf] %v586_v33 }
  0xc5   : > { %v620_v34 = vpop.permute.xlu1 %619  ;;  %v618_v35 = vpop.permute.xlu0 %617 }
  0xc6   : > { %v622_v36 = vsel %vm470_vm2, %v618_v35, %v620_v34  ;;  %v873_v38 = vld [vmem:[#allocation2 + $0x58] sm:$0xff]  ;;  %v870_v43 = vld [vmem:[#allocation2 + $0x40] sm:$0xff] }
  0xc7   : > { %626 = vst [vmem:[#allocation2 + $0x68] sm:$0xf] %v622_v36  ;;  %v1217_v39 = vpack.c.bf16 %v873_v38, %v871_v37 }
  0xc9   : > { %v638_v40 = vpop.permute.xlu1 %637  ;;  %v636_v41 = vpop.permute.xlu0 %635  ;;  %1218 = vmatprep.subr.bf16.mxu0 %v1217_v39 }
  0xca   : > { %v640_v42 = vsel %vm488_vm3, %v636_v41, %v638_v40  ;;  %v872_v44 = vld [vmem:[#allocation2 + $0x50] sm:$0xff] }
  0xcb   : > { %644 = vst [vmem:[#allocation2 + $0x68] sm:$0xf0] %v640_v42  ;;  %v1219_v45 = vpack.c.bf16 %v872_v44, %v870_v43 }
  0xcd   : > { %v655_v46 = vpop.permute.xlu1 %654  ;;  %v653_v47 = vpop.permute.xlu0 %652  ;;  %1220 = vmatpush1.bf16.msra.mxu0 %v1219_v45 }
  0xce   : > { %v657_v48 = vsel %vm507_vm4, %v653_v47, %v655_v46 }
  0xcf   : > { %661 = vst [vmem:[#allocation2 + $0x78] sm:$0xf] %v657_v48 }
  0xd1   : > { %v673_v49 = vpop.permute.xlu1 %672  ;;  %v671_v50 = vpop.permute.xlu0 %670 }
  0xd2   : > { %v675_v51 = vsel %vm525_vm5, %v671_v50, %v673_v49  ;;  %v875_v60 = vld [vmem:[#allocation2 + $0x68] sm:$0xff] }
  0xd3   : > { %679 = vst [vmem:[#allocation2 + $0x78] sm:$0xf0] %v675_v51 }
  0xd5   : > { %v634_v52 = vpop.permute.xlu1 %633  ;;  %v616_v53 = vpop.permute.xlu0 %615 }
  0xd6   : > { %v639_v54 = vsel %vm488_vm3, %v634_v52, %v636_v41  ;;  %v621_v55 = vsel %vm470_vm2, %v616_v53, %v618_v35 }
  0xd7   : > { %643 = vst [vmem:[#allocation2 + $0x60] sm:$0xf0] %v639_v54  ;;  %625 = vst [vmem:[#allocation2 + $0x60] sm:$0xf] %v621_v55 }
  0xd9   : > { %v669_v56 = vpop.permute.xlu1 %668  ;;  %v651_v57 = vpop.permute.xlu0 %650 }
  0xda   : > { %v674_v58 = vsel %vm525_vm5, %v669_v56, %v671_v50  ;;  %v656_v59 = vsel %vm507_vm4, %v651_v57, %v653_v47  ;;  %v877_v61 = vld [vmem:[#allocation2 + $0x78] sm:$0xff] }
  0xdb   : > { %678 = vst [vmem:[#allocation2 + $0x70] sm:$0xf0] %v674_v58  ;;  %660 = vst [vmem:[#allocation2 + $0x70] sm:$0xf] %v656_v59  ;;  %v1221_v62 = vpack.c.bf16 %v877_v61, %v875_v60 }
  0xdd   : > { %v690_v63 = vpop.permute.xlu1 %689  ;;  %v688_v0 = vpop.permute.xlu0 %687  ;;  %1222 = vmatprep.subr.bf16.mxu0 %v1221_v62 }
  0xde   : > { %v692_v1 = vsel %vm544_vm6, %v688_v0, %v690_v63  ;;  %v874_v5 = vld [vmem:[#allocation2 + $0x60] sm:$0xff] }
  0xdf   : > { %696 = vst [vmem:[#allocation2 + $0x88] sm:$0xf] %v692_v1 }
  0xe1   : > { %v708_v2 = vpop.permute.xlu1 %707  ;;  %v706_v3 = vpop.permute.xlu0 %705 }
  0xe2   : > { %v710_v4 = vsel %vm562_vm7, %v706_v3, %v708_v2  ;;  %v876_v6 = vld [vmem:[#allocation2 + $0x70] sm:$0xff] }
  0xe3   : > { %714 = vst [vmem:[#allocation2 + $0x88] sm:$0xf0] %v710_v4  ;;  %v1223_v7 = vpack.c.bf16 %v876_v6, %v874_v5  ;;  %v861_v6 = vld [vmem:[%s1716_s3] sm:$0xff] }
  0xe5   : > { %v732_v8 = vpop.permute.xlu1 %731  ;;  %v730_v9 = vpop.permute.xlu0 %729  ;;  %1224 = vmatpush1.bf16.msra.mxu0 %v1223_v7 }
  0xe6   : > { %v734_v10 = vsel %vm433_vm1, %v730_v9, %v732_v8 }
  0xe7   : > { %738 = vst [vmem:[#allocation2 + $0x98] sm:$0xf0] %v734_v10 }
  0xe9   : > { %v704_v11 = vpop.permute.xlu1 %703  ;;  %v686_v12 = vpop.permute.xlu0 %685 }
  0xea   : > { %v709_v13 = vsel %vm562_vm7, %v704_v11, %v706_v3  ;;  %v691_v14 = vsel %vm544_vm6, %v686_v12, %v688_v0  ;;  %v879_v18 = vld [vmem:[#allocation2 + $0x88] sm:$0xff]  ;;  %v1363_v12 = vmov (!%p1205_p10), 0.0  }
  0xeb   : > { %713 = vst [vmem:[#allocation2 + $0x80] sm:$0xf0] %v709_v13  ;;  %695 = vst [vmem:[#allocation2 + $0x80] sm:$0xf] %v691_v14 }
  0xec   : > { %984 = vst [vmem:[#allocation3] sm:$0xff] (!%p1205_p10), %v1363_v12  ;;  %985 = vst [vmem:[#allocation3 + $0x8] sm:$0xff] (!%p1205_p10), %v1363_v12 }
  0xed   : > { %v747_v15 = vpop.permute.xlu1 %746  ;;  %v728_v16 = vpop.permute.xlu0 %727  ;;  %986 = vst [vmem:[#allocation4] sm:$0xff] (!%p1205_p10), %v1363_v12  ;;  %987 = vst [vmem:[#allocation4 + $0x8] sm:$0xff] (!%p1205_p10), %v1363_v12 }
  0xee   : > { %v733_v17 = vsel %vm433_vm1, %v728_v16, %v730_v9  ;;  %v881_v19 = vld [vmem:[#allocation2 + $0x98] sm:$0xff] }
  0xef   : > { %737 = vst [vmem:[#allocation2 + $0x90] sm:$0xf0] %v733_v17  ;;  %v1225_v20 = vpack.c.bf16 %v881_v19, %v879_v18 }
  0xf1   : > { %v765_v21 = vpop.permute.xlu1 %764  ;;  %v749_v22 = vpop.permute.xlu0 %748  ;;  %1226 = vmatprep.subr.bf16.mxu0 %v1225_v20 }
  0xf2   : > { %v751_v23 = vsel %vm451_vm0, %v747_v15, %v749_v22  ;;  %v878_v27 = vld [vmem:[#allocation2 + $0x80] sm:$0xff] }
  0xf3   : > { %755 = vst [vmem:[#allocation2 + $0xa8] sm:$0xf] %v751_v23 }
  0xf5   : > { %v782_v24 = vpop.permute.xlu1 %781  ;;  %v767_v25 = vpop.permute.xlu0 %766 }
  0xf6   : > { %v769_v26 = vsel %vm470_vm2, %v765_v21, %v767_v25  ;;  %v880_v28 = vld [vmem:[#allocation2 + $0x90] sm:$0xff] }
  0xf7   : > { %773 = vst [vmem:[#allocation2 + $0xa8] sm:$0xf0] %v769_v26  ;;  %v1227_v29 = vpack.c.bf16 %v880_v28, %v878_v27 }
  0xf9   : > { %v800_v30 = vpop.permute.xlu1 %799  ;;  %v784_v31 = vpop.permute.xlu0 %783  ;;  %1228 = vmatpush1.bf16.msra.mxu0 %v1227_v29 }
  0xfa   : > { %v786_v32 = vsel %vm488_vm3, %v782_v24, %v784_v31 }
  0xfb   : > { %790 = vst [vmem:[#allocation2 + $0xb8] sm:$0xf] %v786_v32 }
  0xfd   : > { %v745_v33 = vpop.permute.xlu1 %744  ;;  %v802_v34 = vpop.permute.xlu0 %801 }
  0xfe   : > { %v750_v35 = vsel %vm451_vm0, %v745_v33, %v747_v15  ;;  %v804_v36 = vsel %vm507_vm4, %v800_v30, %v802_v34  ;;  %v883_v44 = vld [vmem:[#allocation2 + $0xa8] sm:$0xff] }
  0xff   : > { %754 = vst [vmem:[#allocation2 + $0xa0] sm:$0xf] %v750_v35  ;;  %808 = vst [vmem:[#allocation2 + $0xb8] sm:$0xf0] %v804_v36 }
 0x101   : > { %v780_v37 = vpop.permute.xlu1 %779  ;;  %v763_v38 = vpop.permute.xlu0 %762 }
 0x102   : > { %v785_v39 = vsel %vm488_vm3, %v780_v37, %v782_v24  ;;  %v768_v40 = vsel %vm470_vm2, %v763_v38, %v765_v21 }
 0x103   : > { %789 = vst [vmem:[#allocation2 + $0xb0] sm:$0xf] %v785_v39  ;;  %772 = vst [vmem:[#allocation2 + $0xa0] sm:$0xf0] %v768_v40 }
 0x105   : > { %v817_v41 = vpop.permute.xlu1 %816  ;;  %v798_v42 = vpop.permute.xlu0 %797 }
 0x106   : > { %v803_v43 = vsel %vm507_vm4, %v798_v42, %v800_v30  ;;  %v885_v45 = vld [vmem:[#allocation2 + $0xb8] sm:$0xff] }
 0x107   : > { %807 = vst [vmem:[#allocation2 + $0xb0] sm:$0xf0] %v803_v43  ;;  %v1229_v46 = vpack.c.bf16 %v885_v45, %v883_v44 }
 0x109   : > { %v835_v47 = vpop.permute.xlu1 %834  ;;  %v819_v48 = vpop.permute.xlu0 %818  ;;  %1230 = vmatprep.subr.bf16.mxu0 %v1229_v46 }
 0x10a   : > { %v821_v49 = vsel %vm525_vm5, %v817_v41, %v819_v48  ;;  %v882_v53 = vld [vmem:[#allocation2 + $0xa0] sm:$0xff] }
 0x10b   : > { %825 = vst [vmem:[#allocation2 + $0xc8] sm:$0xf] %v821_v49 }
 0x10d   : > { %v852_v50 = vpop.permute.xlu1 %851  ;;  %v837_v51 = vpop.permute.xlu0 %836 }
 0x10e   : > { %v839_v52 = vsel %vm544_vm6, %v835_v47, %v837_v51  ;;  %v884_v54 = vld [vmem:[#allocation2 + $0xb0] sm:$0xff] }
 0x10f   : > { %843 = vst [vmem:[#allocation2 + $0xc8] sm:$0xf0] %v839_v52  ;;  %v1231_v55 = vpack.c.bf16 %v884_v54, %v882_v53 }
 0x111   : > { %v815_v56 = vpop.permute.xlu1 %814  ;;  %v854_v57 = vpop.permute.xlu0 %853  ;;  %1232 = vmatpush1.bf16.msra.mxu0 %v1231_v55 }
 0x112   : > { %v820_v58 = vsel %vm525_vm5, %v815_v56, %v817_v41  ;;  %v856_v59 = vsel %vm562_vm7, %v852_v50, %v854_v57 }
 0x113   : > { %824 = vst [vmem:[#allocation2 + $0xc0] sm:$0xf] %v820_v58  ;;  %860 = vst [vmem:[#allocation2 + $0xd8] sm:$0xf] %v856_v59 }
 0x115   : > { %v850_v60 = vpop.permute.xlu1 %849  ;;  %v833_v61 = vpop.permute.xlu0 %832 }
 0x116   : > { %v855_v62 = vsel %vm562_vm7, %v850_v60, %v852_v50  ;;  %v838_v63 = vsel %vm544_vm6, %v833_v61, %v835_v47  ;;  %v887_v0 = vld [vmem:[#allocation2 + $0xc8] sm:$0xff] }
 0x117   : > { %859 = vst [vmem:[#allocation2 + $0xd0] sm:$0xf] %v855_v62  ;;  %842 = vst [vmem:[#allocation2 + $0xc0] sm:$0xf0] %v838_v63 }
 0x11a   : > { %v889_v1 = vld [vmem:[#allocation2 + $0xd8] sm:$0xf] }
 0x11b   : > { %v1233_v2 = vpack.c.bf16 %v889_v1, %v887_v0 }
 0x11d   : > { %1235 = vmatprep.subr.msk.bf16.mxu0 %vm1234_vm10, %v1233_v2 }
 0x11e   : > { %v886_v3 = vld [vmem:[#allocation2 + $0xc0] sm:$0xff]  ;;  %v888_v4 = vld [vmem:[#allocation2 + $0xd0] sm:$0xf] }
 0x11f   : > { %v1236_v5 = vpack.c.bf16 %v888_v4, %v886_v3 }
 0x121   : > { %1238 = vmatpush1.bf16.msk.msra.mxu0 %vm1234_vm10, %v1236_v5 }
 0x124   : > { %1204 = vmatmul.mubr.msk.f32.vlgmr.msra.gmra.mrb[0].mxu0 %vm896_vm11, %v861_v6 }
 0x126   : > { %v894_v7 = vpop.permute.xlu0 %893 }
 0x1f5   : > { %983 = sbr.rel (%p1205_p10) target bundleno = 508 (0x1fc), region = 48 }
 0x1f7   : > { %v973_v8 = vpop.f32.mrb[0].mxu0 }
 0x1f8   : > { %v974_v9 = vadd.f32 %v973_v8, %v894_v7  ;;  %v975_v10 = vpop.f32.mrb[1].mxu0 }
 0x1f9   : > { %v976_v11 = vadd.f32 %v975_v10, %v894_v7 }
 0x1fa   : > { %978 = vst [vmem:[%s409_s10] sm:$0xff] %v974_v9 }
 0x1fb   : > { %979 = vst [vmem:[%s409_s10 + $0x8] sm:$0xff] %v976_v11 }
 0x1fc PF: > { %v990_v13 = vlaneseq  ;;  %v988_v15 = vld [vmem:[%s1718_s5] sm:$0x3]  ;;  %v1003_v21 = vld [vmem:[#allocation3 + $0x8] sm:$0xff]  ;;  %v1008_v24 = vld [vmem:[#allocation4] sm:$0xff]  ;;  %p1206_p11 = scmp.ne.s32.totalorder %s1334_s24, 5 }
 0x1fd   : > { %v1002_v20 = vld [vmem:[#allocation3] sm:$0xff]  ;;  %v1009_v25 = vld [vmem:[#allocation4 + $0x8] sm:$0xff]  ;;  %vm1025_vm12 = vcmask (!%p1206_p11), 7168   ;;  %vm1032_vm13 = vcmask (!%p1206_p11), 15368  }
 0x1fe   : > { %v991_v14 = vshrl.u32 %v990_v13, 7 }
 0x200   : > { %v992_v16 = vsub.s32 0, %v991_v14  ;;  %v996_v17 = vsub.s32 1, %v991_v14 }
 0x202   : > { %v993_v18 = vrot.slane %v988_v15, %v992_v16  ;;  %v997_v19 = vrot.slane %v988_v15, %v996_v17 }
 0x204   : > { %v1000_v22 = vmul.f32 %v993_v18, %v974_v9  ;;  %v1001_v23 = vmul.f32 %v997_v19, %v976_v11  ;;  %1019 = sbr.rel (%p1206_p11) target bundleno = 677 (0x2a5), region = 52 }
 0x206   : > { %v1004_v26 = vadd.f32 %v1002_v20, %v1000_v22  ;;  %v1005_v27 = vadd.f32 %v1003_v21, %v1001_v23  ;;  %v1010_v28 = vmul.f32 %v1000_v22, %v974_v9  ;;  %v1011_v29 = vmul.f32 %v1001_v23, %v976_v11 }
 0x208   : > { %1006 = vst [vmem:[#allocation3] sm:$0xff] %v1004_v26  ;;  %1007 = vst [vmem:[#allocation3 + $0x8] sm:$0xff] %v1005_v27  ;;  %v1012_v30 = vadd.f32 %v1010_v28, %v1008_v24  ;;  %v1013_v31 = vadd.f32 %v1011_v29, %v1009_v25 }
 0x20a   : > { %1014 = vst [vmem:[#allocation4] sm:$0xff] %v1012_v30  ;;  %1015 = vst [vmem:[#allocation4 + $0x8] sm:$0xff] %v1013_v31 }
 0x20f   : > { %v1020_v32 = vld [vmem:[#allocation3] sm:$0xff]  ;;  %v1021_v33 = vld [vmem:[#allocation3 + $0x8] sm:$0xff] }
 0x210   : > { %v1022_v35 = vadd.f32 %v1021_v33, %v1020_v32 }
 0x211   : > { %v1027_v34 = vld [vmem:[#allocation4] sm:$0xff]  ;;  %v1028_v36 = vld [vmem:[#allocation4 + $0x8] sm:$0xff] }
 0x212   : > { %1023 = vadd.xlane.f32.xlu0 %v1022_v35  ;;  %v1029_v37 = vadd.f32 %v1028_v36, %v1027_v34 }
 0x216   : > { %1030 = vadd.xlane.f32.xlu0 %v1029_v37 }
 0x29f   : > { %v1024_v38 = vpop.xlane.xlu0 %1023 }
 0x2a0   : > { %1026 = vst.msk [vmem:[%s1446_s13] sm:$0xff] %vm1025_vm12, %v1024_v38 }
 0x2a3   : > { %v1031_v39 = vpop.xlane.xlu0 %1030 }
 0x2a4   : > { %1033 = vst.msk [vmem:[%s1446_s13] sm:$0xff] %vm1032_vm13, %v1031_v39 }
 0x2a5 PF: > { %s18_s28 = sadd.s32 1, %s1350_s28   ;;  %s1721_s24 = smov %s1342_s26 }
 0x2a6   : > { %p15_p12 = scmp.ge.s32.totalorder %s18_s28, 14   ;;  %s1722_s25 = smov %s1346_s27 }
 0x2a7   : > { %s1723_s26 = smov %s1726_s29  ;;  %s1724_s27 = smov %s1730_s30 }
 0x2a8   :  { %17 = sbr.rel (!%p15_p12) target bundleno = 3 (0x3), region = 100 }

</bundles_post_ra>
